<compile_context>
chip_gen: v6e
topology: v6e:2x2x1
jax: 0.10.0
libtpu: 0.0.40
codegen_flags: <defaults>
</compile_context>

<pallas_src>
import functools

import jax
import jax.numpy as jnp
from jax import lax
from jax.experimental import pallas as pl
from jax.experimental.pallas import tpu as pltpu


def _clip_loss_kernel(scale_ref,          # (1, 1) f32 in SMEM
                      img_i_ref,          # (tm, D) image row tile (native dtype, single-buffered)
                      txt_i_ref,          # (tm, D) text  row tile (native dtype, single-buffered)
                      txt_j_ref,          # (tn, D) text  col tile (streamed)
                      img_j_ref,          # (tn, D) image col tile (streamed)
                      out_ref,            # (1, 8, 128) f32: per-row-block partial loss (splatted)
                      img_s_ref,          # (tm, D) scratch: scale * img row tile
                      txt_s_ref,          # (tm, D) scratch: scale * txt row tile
                      m1_ref, l1_ref,     # (tm, LC) f32 per-lane softmax state, img -> txt
                      m2_ref, l2_ref):    # (tm, LC) f32 per-lane softmax state, txt -> img
    j = pl.program_id(1)
    nj = pl.num_programs(1)
    lc = m1_ref.shape[1]                  # lane-chunk width (128, or tn when tn < 128)

    @pl.when(j == 0)
    def _init():
        scale = scale_ref[0, 0]
        # Fold logit_scale into the row tiles once per row block; keep MXU operands in
        # their native dtype (bf16 stays bf16), softmax math stays f32.
        img_s_ref[...] = (img_i_ref[...].astype(jnp.float32) * scale).astype(img_s_ref.dtype)
        txt_s_ref[...] = (txt_i_ref[...].astype(jnp.float32) * scale).astype(txt_s_ref.dtype)
        m1_ref[...] = jnp.full_like(m1_ref, -jnp.inf)
        l1_ref[...] = jnp.zeros_like(l1_ref)
        m2_ref[...] = jnp.full_like(m2_ref, -jnp.inf)
        l2_ref[...] = jnp.zeros_like(l2_ref)

    def _online_update(s, m_ref, l_ref):
        # s: (tm, tn) f32 logits tile.  Fold tn/lc lane-chunks with elementwise
        # (VALU/EUP) ops only -- no cross-lane reductions inside the j loop.
        n_chunks = s.shape[1] // lc
        step_max = s[:, 0:lc]
        for k in range(1, n_chunks):
            step_max = jnp.maximum(step_max, s[:, k * lc:(k + 1) * lc])
        m_new = jnp.maximum(m_ref[...], step_max)
        acc = l_ref[...] * jnp.exp(m_ref[...] - m_new)
        for k in range(n_chunks):
            acc = acc + jnp.exp(s[:, k * lc:(k + 1) * lc] - m_new)
        l_ref[...] = acc
        m_ref[...] = m_new

    # ---- direction 1: image -> text (rows of L) ---------------------------------
    s1 = lax.dot_general(img_s_ref[...], txt_j_ref[...],
                         dimension_numbers=(((1,), (1,)), ((), ())),
                         preferred_element_type=jnp.float32)          # (tm, tn) f32
    _online_update(s1, m1_ref, l1_ref)

    # ---- direction 2: text -> image (rows of L.T), same streamed tiles ----------
    s2 = lax.dot_general(txt_s_ref[...], img_j_ref[...],
                         dimension_numbers=(((1,), (1,)), ((), ())),
                         preferred_element_type=jnp.float32)          # (tm, tn) f32
    _online_update(s2, m2_ref, l2_ref)

    @pl.when(j == nj - 1)
    def _finalize():
        # Diagonal (correct-pair) logits straight from the (tm, D) tiles; img_s already
        # carries logit_scale.  f32 accumulation.  Cross-lane work happens only here,
        # once per row block.
        diag = jnp.sum(img_s_ref[...].astype(jnp.float32)
                       * txt_i_ref[...].astype(jnp.float32),
                       axis=1, keepdims=True)                          # (tm, 1)

        def _row_lse(m_ref, l_ref):
            m_row = jnp.max(m_ref[...], axis=1, keepdims=True)         # (tm, 1)
            l_row = jnp.sum(l_ref[...] * jnp.exp(m_ref[...] - m_row),
                            axis=1, keepdims=True)                     # (tm, 1)
            return m_row + jnp.log(l_row)

        vals = _row_lse(m1_ref, l1_ref) + _row_lse(m2_ref, l2_ref) - 2.0 * diag  # (tm, 1)
        blk = jnp.sum(vals, axis=0, keepdims=True)                     # (1, 1) per-block sum
        # Lane-dense, unmasked full-vreg store (one per row block).
        out_ref[...] = jnp.broadcast_to(blk.reshape(1, 1, 1), out_ref.shape)


@functools.partial(jax.jit, static_argnames=("block_m", "block_n", "vmem_limit_bytes"))
def clip_loss(image_features, text_features, logit_scale, *,
              block_m: int = 512, block_n: int = 256, vmem_limit_bytes=None):
    """CLIP loss.  image_features/text_features: (N, D) same dtype; logit_scale scalar.

    Tile-size guidance (per the perf review): v6e bf16 -> block_m>=768; v7x -> block_m
    384-512 bf16 (keep n//block_m >= 2 and even for both TensorCores); v5e -> 256-512.
    """
    n, d = image_features.shape
    assert text_features.shape == (n, d)
    assert text_features.dtype == image_features.dtype
    dtype = image_features.dtype
    itemsize = jnp.dtype(dtype).itemsize
    sub = 32 // itemsize                  # min sublane multiple: 8 (f32) / 16 (bf16)

    tm = min(block_m, n)
    tn = min(block_n, n)
    assert n % tm == 0 and n % tn == 0, \
        "batch must be divisible by the tile sizes (no padding/masking support)"
    assert tm == n or tm % sub == 0, f"block_m must be a multiple of {sub} for {dtype}"
    assert tn == n or tn % sub == 0, f"block_n must be a multiple of {sub} for {dtype}"
    assert tn % 128 == 0 or tn <= 128, "block_n must be a multiple of 128 (or <= 128)"

    lc = 128 if tn % 128 == 0 else tn     # lane-chunk width of the per-lane accumulators
    n_row_blocks = n // tm
    grid = (n_row_blocks, n // tn)        # (row tiles: parallel, col tiles: reduction)
    scale = jnp.asarray(logit_scale, jnp.float32).reshape(1, 1)

    cost = pl.CostEstimate(
        flops=4 * n * n * d,                                      # two N x N x D matmuls
        transcendentals=2 * n * n + 4 * n,                        # exps (+ finalize logs)
        bytes_accessed=(2 * n * d * itemsize * n_row_blocks       # re-streamed col tiles
                        + 2 * n * d * itemsize                    # row tiles (once)
                        + n_row_blocks * 8 * 128 * 4),            # lane-dense output
    )

    per_block = pl.pallas_call(
        _clip_loss_kernel,
        out_shape=jax.ShapeDtypeStruct((n_row_blocks, 8, 128), jnp.float32),
        grid_spec=pltpu.PrefetchScalarGridSpec(
            num_scalar_prefetch=0,
            grid=grid,
            in_specs=[
                pl.BlockSpec(memory_space=pltpu.SMEM),                     # logit_scale (1,1)
                pl.BlockSpec((tm, d), lambda i, j: (i, 0),                 # image row tile
                             pipeline_mode=pl.Buffered(1)),                #   (i-only: single-buffer)
                pl.BlockSpec((tm, d), lambda i, j: (i, 0),                 # text  row tile
                             pipeline_mode=pl.Buffered(1)),
                pl.BlockSpec((tn, d), lambda i, j: (j, 0)),                # text  col tile (streamed)
                pl.BlockSpec((tn, d), lambda i, j: (j, 0)),                # image col tile (streamed)
            ],
            out_specs=pl.BlockSpec((1, 8, 128), lambda i, j: (i, 0, 0)),   # scalar-per-row-block
            scratch_shapes=[
                pltpu.VMEM((tm, d), dtype),         # scale * img row tile
                pltpu.VMEM((tm, d), dtype),         # scale * txt row tile
                pltpu.VMEM((tm, lc), jnp.float32),  # m1 (per-lane)
                pltpu.VMEM((tm, lc), jnp.float32),  # l1 (per-lane)
                pltpu.VMEM((tm, lc), jnp.float32),  # m2 (per-lane)
                pltpu.VMEM((tm, lc), jnp.float32),  # l2 (per-lane)
            ],
        ),
        compiler_params=pltpu.CompilerParams(
            dimension_semantics=("parallel", "arbitrary"),
            vmem_limit_bytes=vmem_limit_bytes),
        cost_estimate=cost,
    )(scale, image_features, text_features, text_features, image_features)

    # Tiny final reduction: sum over row blocks / (2N) == 0.5 * (CE(L) + CE(L.T)).
    return jnp.sum(per_block[:, 0, 0]) / (2.0 * n)


def clip_loss_ref(image_features, text_features, logit_scale):
    """Pure-JAX reference matching the PyTorch module."""
    logits = logit_scale * (image_features.astype(jnp.float32)
                            @ text_features.astype(jnp.float32).T)
    labels = jnp.arange(logits.shape[0])

    def ce(lg):
        lse = jax.scipy.special.logsumexp(lg, axis=1)
        correct = lg[jnp.arange(lg.shape[0]), labels]
        return jnp.mean(lse - correct)

    return 0.5 * (ce(logits) + ce(logits.T))


if __name__ == "__main__":
    key = jax.random.PRNGKey(0)
    k1, k2 = jax.random.split(key)

    # Small CLIP-like batch: N paired embeddings, lane-dense feature dim D = 128.
    N, D = 256, 128
    img = jax.random.normal(k1, (N, D), dtype=jnp.float32)
    txt = jax.random.normal(k2, (N, D), dtype=jnp.float32)
    img = img / jnp.linalg.norm(img, axis=-1, keepdims=True)
    txt = txt / jnp.linalg.norm(txt, axis=-1, keepdims=True)
    logit_scale = jnp.exp(jnp.float32(2.6592))   # CLIP init: exp(log(1/0.07))

    ref_f32 = clip_loss_ref(img, txt, logit_scale)

    # f32, explicit 2x2 grid -> exercises per-lane online-softmax accumulation
    # across col tiles and multiple row blocks.
    loss_tiled = clip_loss(img, txt, logit_scale, block_m=128, block_n=128)
    jax.block_until_ready(loss_tiled)
    assert jnp.allclose(loss_tiled, ref_f32, rtol=1e-4, atol=1e-4), (loss_tiled, ref_f32)

    # f32, default (large-tile) config -> single tile per axis.
    loss_default = clip_loss(img, txt, logit_scale)
    jax.block_until_ready(loss_default)
    assert jnp.allclose(loss_default, ref_f32, rtol=1e-4, atol=1e-4), (loss_default, ref_f32)

    # bf16 operands fed straight to the MXU (f32 accumulation), 2x2 grid.
    img_bf = img.astype(jnp.bfloat16)
    txt_bf = txt.astype(jnp.bfloat16)
    loss_bf16 = clip_loss(img_bf, txt_bf, logit_scale, block_m=128, block_n=128)
    jax.block_until_ready(loss_bf16)
    ref_bf16 = clip_loss_ref(img_bf.astype(jnp.float32),
                             txt_bf.astype(jnp.float32), logit_scale)
    assert jnp.allclose(loss_bf16, ref_bf16, rtol=5e-2, atol=5e-2), (loss_bf16, ref_bf16)

    print("KERNEL_OK")
</pallas_src>

<mosaic_0001>
module attributes {stable_mosaic.version = 11 : i64} {
  func.func @_clip_loss_kernel(%arg0: i32, %arg1: i32, %arg2: memref<1x1xf32, #tpu.memory_space<smem>>, %arg3: memref<128x128xf32, #tpu.memory_space<vmem>>, %arg4: memref<128x128xf32, #tpu.memory_space<vmem>>, %arg5: memref<128x128xf32, #tpu.memory_space<vmem>>, %arg6: memref<128x128xf32, #tpu.memory_space<vmem>>, %arg7: memref<1x8x128xf32, #tpu.memory_space<vmem>>, %arg8: memref<128x128xf32, #tpu.memory_space<vmem>>, %arg9: memref<128x128xf32, #tpu.memory_space<vmem>>, %arg10: memref<128x128xf32, #tpu.memory_space<vmem>>, %arg11: memref<128x128xf32, #tpu.memory_space<vmem>>, %arg12: memref<128x128xf32, #tpu.memory_space<vmem>>, %arg13: memref<128x128xf32, #tpu.memory_space<vmem>>) attributes {dimension_semantics = [#tpu.dimension_semantics<parallel>, #tpu.dimension_semantics<arbitrary>], iteration_bounds = array<i64: 2, 2>, scalar_prefetch = 0 : i64, scratch_operands = 6 : i64, tpu.core_type = #tpu.core_type<tc>, window_params = [{transform_indices = @transform_0, window_bounds = array<i64: 1, 1>}, {pipeline_mode = #tpu.pipeline_mode<synchronous>, transform_indices = @transform_1, window_bounds = array<i64: 128, 128>}, {pipeline_mode = #tpu.pipeline_mode<synchronous>, transform_indices = @transform_2, window_bounds = array<i64: 128, 128>}, {transform_indices = @transform_3, window_bounds = array<i64: 128, 128>}, {transform_indices = @transform_4, window_bounds = array<i64: 128, 128>}, {transform_indices = @transform_5, window_bounds = array<i64: 1, 8, 128>}]} {
    %c0_i32 = arith.constant 0 : i32
    %0 = arith.cmpi eq, %arg1, %c0_i32 : i32
    %1 = arith.extui %0 : i1 to i32
    %c0_i32_0 = arith.constant 0 : i32
    %2 = arith.cmpi ne, %1, %c0_i32_0 : i32
    scf.if %2 {
      %c0_30 = arith.constant 0 : index
      %c0_31 = arith.constant 0 : index
      %36 = memref.load %arg2[%c0_30, %c0_31] : memref<1x1xf32, #tpu.memory_space<smem>>
      %c0_32 = arith.constant 0 : index
      %c0_33 = arith.constant 0 : index
      %37 = vector.load %arg3[%c0_32, %c0_33] : memref<128x128xf32, #tpu.memory_space<vmem>>, vector<128x128xf32>
      %38 = vector.broadcast %36 : f32 to vector<128x128xf32>
      %39 = arith.mulf %37, %38 : vector<128x128xf32>
      %c0_34 = arith.constant 0 : index
      %c0_35 = arith.constant 0 : index
      %40 = vector.load %arg8[%c0_34, %c0_35] : memref<128x128xf32, #tpu.memory_space<vmem>>, vector<128x128xf32>
      tpu.vector_store %arg8[%c0_34, %c0_35], %39 {strides = array<i32>} : memref<128x128xf32, #tpu.memory_space<vmem>>, vector<128x128xf32>,
      %c0_36 = arith.constant 0 : index
      %c0_37 = arith.constant 0 : index
      %41 = vector.load %arg4[%c0_36, %c0_37] : memref<128x128xf32, #tpu.memory_space<vmem>>, vector<128x128xf32>
      %42 = vector.broadcast %36 : f32 to vector<128x128xf32>
      %43 = arith.mulf %41, %42 : vector<128x128xf32>
      %c0_38 = arith.constant 0 : index
      %c0_39 = arith.constant 0 : index
      %44 = vector.load %arg9[%c0_38, %c0_39] : memref<128x128xf32, #tpu.memory_space<vmem>>, vector<128x128xf32>
      tpu.vector_store %arg9[%c0_38, %c0_39], %43 {strides = array<i32>} : memref<128x128xf32, #tpu.memory_space<vmem>>, vector<128x128xf32>,
      %cst_40 = arith.constant 0xFF800000 : f32
      %45 = vector.broadcast %cst_40 : f32 to vector<128x128xf32>
      %c0_41 = arith.constant 0 : index
      %c0_42 = arith.constant 0 : index
      %46 = vector.load %arg10[%c0_41, %c0_42] : memref<128x128xf32, #tpu.memory_space<vmem>>, vector<128x128xf32>
      tpu.vector_store %arg10[%c0_41, %c0_42], %45 {strides = array<i32>} : memref<128x128xf32, #tpu.memory_space<vmem>>, vector<128x128xf32>,
      %cst_43 = arith.constant 0.000000e+00 : f32
      %47 = vector.broadcast %cst_43 : f32 to vector<128x128xf32>
      %c0_44 = arith.constant 0 : index
      %c0_45 = arith.constant 0 : index
      %48 = vector.load %arg11[%c0_44, %c0_45] : memref<128x128xf32, #tpu.memory_space<vmem>>, vector<128x128xf32>
      tpu.vector_store %arg11[%c0_44, %c0_45], %47 {strides = array<i32>} : memref<128x128xf32, #tpu.memory_space<vmem>>, vector<128x128xf32>,
      %cst_46 = arith.constant 0xFF800000 : f32
      %49 = vector.broadcast %cst_46 : f32 to vector<128x128xf32>
      %c0_47 = arith.constant 0 : index
      %c0_48 = arith.constant 0 : index
      %50 = vector.load %arg12[%c0_47, %c0_48] : memref<128x128xf32, #tpu.memory_space<vmem>>, vector<128x128xf32>
      tpu.vector_store %arg12[%c0_47, %c0_48], %49 {strides = array<i32>} : memref<128x128xf32, #tpu.memory_space<vmem>>, vector<128x128xf32>,
      %cst_49 = arith.constant 0.000000e+00 : f32
      %51 = vector.broadcast %cst_49 : f32 to vector<128x128xf32>
      %c0_50 = arith.constant 0 : index
      %c0_51 = arith.constant 0 : index
      %52 = vector.load %arg13[%c0_50, %c0_51] : memref<128x128xf32, #tpu.memory_space<vmem>>, vector<128x128xf32>
      tpu.vector_store %arg13[%c0_50, %c0_51], %51 {strides = array<i32>} : memref<128x128xf32, #tpu.memory_space<vmem>>, vector<128x128xf32>,
    } else {
    }
    %c0 = arith.constant 0 : index
    %c0_1 = arith.constant 0 : index
    %3 = vector.load %arg8[%c0, %c0_1] : memref<128x128xf32, #tpu.memory_space<vmem>>, vector<128x128xf32>
    %c0_2 = arith.constant 0 : index
    %c0_3 = arith.constant 0 : index
    %4 = vector.load %arg5[%c0_2, %c0_3] : memref<128x128xf32, #tpu.memory_space<vmem>>, vector<128x128xf32>
    %cst = arith.constant dense<0.000000e+00> : vector<128x128xf32>
    %5 = tpu.matmul %3, %4, %cst {dimension_numbers = #tpu.dot_dimension_numbers<[1], [1], [0], [0], [0, 0, 1, 0], [], []>} : vector<128x128xf32>, vector<128x128xf32>, vector<128x128xf32> -> vector<128x128xf32>
    %c0_4 = arith.constant 0 : index
    %c0_5 = arith.constant 0 : index
    %6 = vector.load %arg10[%c0_4, %c0_5] : memref<128x128xf32, #tpu.memory_space<vmem>>, vector<128x128xf32>
    %7 = arith.maximumf %6, %5 : vector<128x128xf32>
    %c0_6 = arith.constant 0 : index
    %c0_7 = arith.constant 0 : index
    %8 = vector.load %arg11[%c0_6, %c0_7] : memref<128x128xf32, #tpu.memory_space<vmem>>, vector<128x128xf32>
    %c0_8 = arith.constant 0 : index
    %c0_9 = arith.constant 0 : index
    %9 = vector.load %arg10[%c0_8, %c0_9] : memref<128x128xf32, #tpu.memory_space<vmem>>, vector<128x128xf32>
    %10 = arith.subf %9, %7 : vector<128x128xf32>
    %11 = math.exp %10 : vector<128x128xf32>
    %12 = arith.mulf %8, %11 : vector<128x128xf32>
    %13 = arith.subf %5, %7 : vector<128x128xf32>
    %14 = math.exp %13 : vector<128x128xf32>
    %15 = arith.addf %12, %14 : vector<128x128xf32>
    %c0_10 = arith.constant 0 : index
    %c0_11 = arith.constant 0 : index
    %16 = vector.load %arg11[%c0_10, %c0_11] : memref<128x128xf32, #tpu.memory_space<vmem>>, vector<128x128xf32>
    tpu.vector_store %arg11[%c0_10, %c0_11], %15 {strides = array<i32>} : memref<128x128xf32, #tpu.memory_space<vmem>>, vector<128x128xf32>,
    %c0_12 = arith.constant 0 : index
    %c0_13 = arith.constant 0 : index
    %17 = vector.load %arg10[%c0_12, %c0_13] : memref<128x128xf32, #tpu.memory_space<vmem>>, vector<128x128xf32>
    tpu.vector_store %arg10[%c0_12, %c0_13], %7 {strides = array<i32>} : memref<128x128xf32, #tpu.memory_space<vmem>>, vector<128x128xf32>,
    %c0_14 = arith.constant 0 : index
    %c0_15 = arith.constant 0 : index
    %18 = vector.load %arg9[%c0_14, %c0_15] : memref<128x128xf32, #tpu.memory_space<vmem>>, vector<128x128xf32>
    %c0_16 = arith.constant 0 : index
    %c0_17 = arith.constant 0 : index
    %19 = vector.load %arg6[%c0_16, %c0_17] : memref<128x128xf32, #tpu.memory_space<vmem>>, vector<128x128xf32>
    %cst_18 = arith.constant dense<0.000000e+00> : vector<128x128xf32>
    %20 = tpu.matmul %18, %19, %cst_18 {dimension_numbers = #tpu.dot_dimension_numbers<[1], [1], [0], [0], [0, 0, 1, 0], [], []>} : vector<128x128xf32>, vector<128x128xf32>, vector<128x128xf32> -> vector<128x128xf32>
    %c0_19 = arith.constant 0 : index
    %c0_20 = arith.constant 0 : index
    %21 = vector.load %arg12[%c0_19, %c0_20] : memref<128x128xf32, #tpu.memory_space<vmem>>, vector<128x128xf32>
    %22 = arith.maximumf %21, %20 : vector<128x128xf32>
    %c0_21 = arith.constant 0 : index
    %c0_22 = arith.constant 0 : index
    %23 = vector.load %arg13[%c0_21, %c0_22] : memref<128x128xf32, #tpu.memory_space<vmem>>, vector<128x128xf32>
    %c0_23 = arith.constant 0 : index
    %c0_24 = arith.constant 0 : index
    %24 = vector.load %arg12[%c0_23, %c0_24] : memref<128x128xf32, #tpu.memory_space<vmem>>, vector<128x128xf32>
    %25 = arith.subf %24, %22 : vector<128x128xf32>
    %26 = math.exp %25 : vector<128x128xf32>
    %27 = arith.mulf %23, %26 : vector<128x128xf32>
    %28 = arith.subf %20, %22 : vector<128x128xf32>
    %29 = math.exp %28 : vector<128x128xf32>
    %30 = arith.addf %27, %29 : vector<128x128xf32>
    %c0_25 = arith.constant 0 : index
    %c0_26 = arith.constant 0 : index
    %31 = vector.load %arg13[%c0_25, %c0_26] : memref<128x128xf32, #tpu.memory_space<vmem>>, vector<128x128xf32>
    tpu.vector_store %arg13[%c0_25, %c0_26], %30 {strides = array<i32>} : memref<128x128xf32, #tpu.memory_space<vmem>>, vector<128x128xf32>,
    %c0_27 = arith.constant 0 : index
    %c0_28 = arith.constant 0 : index
    %32 = vector.load %arg12[%c0_27, %c0_28] : memref<128x128xf32, #tpu.memory_space<vmem>>, vector<128x128xf32>
    tpu.vector_store %arg12[%c0_27, %c0_28], %22 {strides = array<i32>} : memref<128x128xf32, #tpu.memory_space<vmem>>, vector<128x128xf32>,
    %c1_i32 = arith.constant 1 : i32
    %33 = arith.cmpi eq, %arg1, %c1_i32 : i32
    %34 = arith.extui %33 : i1 to i32
    %c0_i32_29 = arith.constant 0 : i32
    %35 = arith.cmpi ne, %34, %c0_i32_29 : i32
    scf.if %35 {
      %c0_30 = arith.constant 0 : index
      %c0_31 = arith.constant 0 : index
      %36 = vector.load %arg8[%c0_30, %c0_31] : memref<128x128xf32, #tpu.memory_space<vmem>>, vector<128x128xf32>
      %c0_32 = arith.constant 0 : index
      %c0_33 = arith.constant 0 : index
      %37 = vector.load %arg4[%c0_32, %c0_33] : memref<128x128xf32, #tpu.memory_space<vmem>>, vector<128x128xf32>
      %38 = arith.mulf %36, %37 : vector<128x128xf32>
      %cst_34 = arith.constant dense<0.000000e+00> : vector<128xf32>
      %39 = vector.multi_reduction <add>, %38, %cst_34 [1] : vector<128x128xf32> to vector<128xf32>
      %40 = vector.shape_cast %39 : vector<128xf32> to vector<128x1xf32>
      %c0_35 = arith.constant 0 : index
      %c0_36 = arith.constant 0 : index
      %41 = vector.load %arg10[%c0_35, %c0_36] : memref<128x128xf32, #tpu.memory_space<vmem>>, vector<128x128xf32>
      %cst_37 = arith.constant dense<0xFF800000> : vector<128xf32>
      %42 = vector.multi_reduction <maximumf>, %41, %cst_37 [1] : vector<128x128xf32> to vector<128xf32>
      %43 = vector.shape_cast %42 : vector<128xf32> to vector<128x1xf32>
      %c0_38 = arith.constant 0 : index
      %c0_39 = arith.constant 0 : index
      %44 = vector.load %arg11[%c0_38, %c0_39] : memref<128x128xf32, #tpu.memory_space<vmem>>, vector<128x128xf32>
      %c0_40 = arith.constant 0 : index
      %c0_41 = arith.constant 0 : index
      %45 = vector.load %arg10[%c0_40, %c0_41] : memref<128x128xf32, #tpu.memory_space<vmem>>, vector<128x128xf32>
      %46 = vector.broadcast %43 : vector<128x1xf32> to vector<128x128xf32>
      %47 = arith.subf %45, %46 : vector<128x128xf32>
      %48 = math.exp %47 : vector<128x128xf32>
      %49 = arith.mulf %44, %48 : vector<128x128xf32>
      %cst_42 = arith.constant dense<0.000000e+00> : vector<128xf32>
      %50 = vector.multi_reduction <add>, %49, %cst_42 [1] : vector<128x128xf32> to vector<128xf32>
      %51 = vector.shape_cast %50 : vector<128xf32> to vector<128x1xf32>
      %52 = math.log %51 : vector<128x1xf32>
      %53 = arith.addf %43, %52 : vector<128x1xf32>
      %c0_43 = arith.constant 0 : index
      %c0_44 = arith.constant 0 : index
      %54 = vector.load %arg12[%c0_43, %c0_44] : memref<128x128xf32, #tpu.memory_space<vmem>>, vector<128x128xf32>
      %cst_45 = arith.constant dense<0xFF800000> : vector<128xf32>
      %55 = vector.multi_reduction <maximumf>, %54, %cst_45 [1] : vector<128x128xf32> to vector<128xf32>
      %56 = vector.shape_cast %55 : vector<128xf32> to vector<128x1xf32>
      %c0_46 = arith.constant 0 : index
      %c0_47 = arith.constant 0 : index
      %57 = vector.load %arg13[%c0_46, %c0_47] : memref<128x128xf32, #tpu.memory_space<vmem>>, vector<128x128xf32>
      %c0_48 = arith.constant 0 : index
      %c0_49 = arith.constant 0 : index
      %58 = vector.load %arg12[%c0_48, %c0_49] : memref<128x128xf32, #tpu.memory_space<vmem>>, vector<128x128xf32>
      %59 = vector.broadcast %56 : vector<128x1xf32> to vector<128x128xf32>
      %60 = arith.subf %58, %59 : vector<128x128xf32>
      %61 = math.exp %60 : vector<128x128xf32>
      %62 = arith.mulf %57, %61 : vector<128x128xf32>
      %cst_50 = arith.constant dense<0.000000e+00> : vector<128xf32>
      %63 = vector.multi_reduction <add>, %62, %cst_50 [1] : vector<128x128xf32> to vector<128xf32>
      %64 = vector.shape_cast %63 : vector<128xf32> to vector<128x1xf32>
      %65 = math.log %64 : vector<128x1xf32>
      %66 = arith.addf %56, %65 : vector<128x1xf32>
      %67 = arith.addf %53, %66 : vector<128x1xf32>
      %cst_51 = arith.constant 2.000000e+00 : f32
      %68 = vector.broadcast %cst_51 : f32 to vector<128x1xf32>
      %69 = arith.mulf %68, %40 : vector<128x1xf32>
      %70 = arith.subf %67, %69 : vector<128x1xf32>
      %cst_52 = arith.constant dense<0.000000e+00> : vector<1xf32>
      %71 = vector.multi_reduction <add>, %70, %cst_52 [0] : vector<128x1xf32> to vector<1xf32>
      %72 = vector.shape_cast %71 : vector<1xf32> to vector<1x1xf32>
      %73 = vector.shape_cast %72 : vector<1x1xf32> to vector<1x1x1xf32>
      %74 = vector.shape_cast %73 : vector<1x1x1xf32> to vector<1x1x1xf32>
      %75 = vector.broadcast %74 : vector<1x1x1xf32> to vector<1x8x128xf32>
      %c0_53 = arith.constant 0 : index
      %c0_54 = arith.constant 0 : index
      %c0_55 = arith.constant 0 : index
      %76 = vector.load %arg7[%c0_53, %c0_54, %c0_55] : memref<1x8x128xf32, #tpu.memory_space<vmem>>, vector<1x8x128xf32>
      tpu.vector_store %arg7[%c0_53, %c0_54, %c0_55], %75 {strides = array<i32>} : memref<1x8x128xf32, #tpu.memory_space<vmem>>, vector<1x8x128xf32>,
    } else {
    }
    return
  }
  func.func @transform_0(%arg0: i32, %arg1: i32) -> (i32, i32) {
    %c0_i32 = arith.constant 0 : i32
    %c0_i32_0 = arith.constant 0 : i32
    %c0_i32_1 = arith.constant 0 : i32
    return %c0_i32, %c0_i32_0 : i32, i32
  }
  func.func @transform_1(%arg0: i32, %arg1: i32) -> (i32, i32) {
    %c0_i32 = arith.constant 0 : i32
    %c0_i32_0 = arith.constant 0 : i32
    return %arg0, %c0_i32 : i32, i32
  }
  func.func @transform_2(%arg0: i32, %arg1: i32) -> (i32, i32) {
    %c0_i32 = arith.constant 0 : i32
    %c0_i32_0 = arith.constant 0 : i32
    return %arg0, %c0_i32 : i32, i32
  }
  func.func @transform_3(%arg0: i32, %arg1: i32) -> (i32, i32) {
    %c0_i32 = arith.constant 0 : i32
    %c0_i32_0 = arith.constant 0 : i32
    return %arg1, %c0_i32 : i32, i32
  }
  func.func @transform_4(%arg0: i32, %arg1: i32) -> (i32, i32) {
    %c0_i32 = arith.constant 0 : i32
    %c0_i32_0 = arith.constant 0 : i32
    return %arg1, %c0_i32 : i32, i32
  }
  func.func @transform_5(%arg0: i32, %arg1: i32) -> (i32, i32, i32) {
    %c0_i32 = arith.constant 0 : i32
    %c0_i32_0 = arith.constant 0 : i32
    %c0_i32_1 = arith.constant 0 : i32
    return %arg0, %c0_i32, %c0_i32_0 : i32, i32, i32
  }
}

</mosaic_0001>

<bundles_post_ra>
// kernel: clip_loss.1
= control target key start
LH: loop header
LB: loop body
LE: loop exit
PB: predicated region body
PF: predicated region fallthrough
CT: control target
= control target key end

     0   :  { %s3480_s0 = inlined_call_operand.<no memory space> [shape: f32[1,1], index: 0, kind: input, shape index: {}]   ;;  %s3481_s1 = inlined_call_operand.hbm [shape: f32[256,128], index: 1, kind: input, shape index: {}, may-alias: {1,4}]   ;;  %s3482_s2 = inlined_call_operand.hbm [shape: f32[256,128], index: 2, kind: input, shape index: {}, may-alias: {2,3}]   ;;  %s3483_s3 = inlined_call_operand.hbm [shape: f32[256,128], index: 3, kind: input, shape index: {}, may-alias: {2,3}]   ;;  %s3484_s4 = inlined_call_operand.hbm [shape: f32[256,128], index: 4, kind: input, shape index: {}, may-alias: {1,4}]   ;;  %s3485_s5 = inlined_call_operand.vmem [shape: f32[2,8,128], index: 5, kind: output, shape index: {}]  }
   0x1   :  { %3506 = sst [smem:[#allocation26_spill]] %s3481_s1 }
   0x2   :  { %3507 = sst [smem:[#allocation27_spill]] %s3483_s3 }
   0x3   :  { %10 = sst [smem:[#allocation8]] %s3480_s0 }
   0x4   :  { %11 = vsyncpa [#allocation10], 0 }
   0x5   :  { %12 = vsyncpa [#allocation12], 0  ;;  %s2793_s20 = smov 0   ;;  %s2795_s21 = smov 0  }
   0x6   :  { %s2797_s22 = smov 0   ;;  %s2799_s23 = smov 0  }
   0x7   :  { %s2801_s24 = smov 0   ;;  %s2803_s25 = smov 0  }
   0x8   :  { %s2805_s26 = smov 0   ;;  %s2807_s27 = smov 0  }
   0x9   :  { %s2809_s28 = smov 0   ;;  %s2811_s0 = smov 0  }
   0xa   :  { %s2813_s29 = smov 0  }
   0xb LB: > { %3508 = sst [smem:[#allocation18_spill]] %s2718_s22  ;;  %s3490_s30 = sadd.s32 4294967295, %s2750_s29   ;;  %s2750_s29 = sphi %s2813_s29, %s18_s29   ;;  %s2746_s0 = sphi %s2811_s0, %s3540_s0   ;;  %s2742_s28 = sphi %s2809_s28, %s3544_s28   ;;  %s2738_s27 = sphi %s2807_s27, %s3538_s27   ;;  %s2734_s26 = sphi %s2805_s26, %s3543_s26   ;;  %s2730_s25 = sphi %s2803_s25, %s3537_s25   ;;  %s2726_s24 = sphi %s2801_s24, %s3536_s24   ;;  %s2722_s23 = sphi %s2799_s23, %s3535_s23   ;;  %s2718_s22 = sphi %s2797_s22, %s3534_s22   ;;  %s2714_s21 = sphi %s2795_s21, %s3542_s21   ;;  %s2710_s20 = sphi %s2793_s20, %s3541_s20  }
   0xc   : > { %3509 = sst [smem:[#allocation19_spill]] %s2726_s24  ;;  %p71_p0 = scmp.ne.s32.totalorder %s2726_s24, %s2722_s23 }
   0xd   : > { %3510 = sst [smem:[#allocation20_spill]] %s2730_s25  ;;  %p72_p1 = scmp.eq.s32.totalorder %s3490_s30, 0 }
   0xe   : > { %3511 = sst [smem:[#allocation21_spill]] %s2746_s0  ;;  %p123_p2 = scmp.ne.s32.totalorder %s2714_s21, %s2710_s20 }
   0xf   : > { %p1967_p3 = scmp.ge.s32.totalorder %s2750_s29, 1  ;;  %p186_p4 = scmp.lt.s32.totalorder %s2750_s29, 5 }
  0x10   : > { %p2851_p5 = por %p72_p1, %p71_p0  ;;  %p2855_p6 = por %p123_p2, %p72_p1 }
  0x11   : > { %p2859_p7 = pnand %p1967_p3, %p186_p4  ;;  %s3495_s9 = sshll.u32 %s2738_s27, 11 }
  0x12   : > { %s3512_s6 = scalar_select %p2851_p5, 1, 0 }
  0x13   : > { %s3513_s7 = scalar_select %p2855_p6, 1, 0 }
  0x14   : > { %s3514_s8 = scalar_select %p2859_p7, 1, 0 }
  0x15   : > { %s3515_s1 = sld [smem:[#allocation26_spill]]  ;;  %p2175_p8 = pneg %p2859_p7 }
  0x16   : > { %s2752_s13 = smov [#allocation9]  }
  0x17   : > { %s204_s14 = sshll.u32 %s2752_s13, 4  ;;  %p2875_p9 = pnand %p2175_p8, %p2851_p5  ;;  %s205_s14 = int_to_ptr.vmem [resolvable:$true] %s204_s14 }
  0x19   : > { %p2542_p11 = pneg %p2875_p9 }
  0x1b   : > { %s2869_s12 = scalar_lea.hbm %s3515_s1, %s3495_s9  ;;  %s2545_s19 = scalar_lea.hbm %s3515_s1, 4096 }
  0x1c   : > { %s2540_s16 = scalar_lea.hbm %s2869_s12, 2048  ;;  %p2546_p0 = scmp.lt.s32.totalorder %s2869_s12, %s3515_s1 }
  0x1d   : > { %p2541_p10 = scmp.ne.s32.totalorder %s2869_s12, %s2540_s16  ;;  %p2547_p1 = scmp.lt.s32.totalorder %s2545_s19, %s2540_s16 }
  0x1f   : > { %p2543_p12 = pnand %p2542_p11, %p2541_p10  ;;  %p2548_p2 = por %p2547_p1, %p2546_p0 }
  0x21   : > { %p2544_p13 = pneg %p2543_p12 }
  0x23   : > { %p2549_p3 = pnand %p2548_p2, %p2544_p13 }
  0x25   : > { %2552 = shalt.err (!%p2549_p3)
}
  0x26   : > { %s2553_s10 = scalar_lea.vmem %s205_s14, 2048  ;;  %p2561_p12 = scmp.lt.s32.totalorder %s205_s14, %s205_s14 }
  0x27   : > { %p2554_p4 = scmp.ne.s32.totalorder %s205_s14, %s2553_s10  ;;  %p2562_p6 = scmp.lt.s32.totalorder %s2553_s10, %s2553_s10 }
  0x29   : > { %p2556_p8 = pnand %p2554_p4, %p2542_p11  ;;  %p2563_p5 = por %p2562_p6, %p2561_p12 }
  0x2b   : > { %p2557_p10 = pneg %p2556_p8 }
  0x2d   : > { %p2564_p7 = pnand %p2563_p5, %p2557_p10 }
  0x2f   : > { %2567 = shalt.err (!%p2564_p7)
}
  0x30   : > { %s3491_s11 = smov 128   ;;  %s3493_s13 = smov 8  }
  0x31   : > { %2178 = dma.hbm_to_vmem [thread:$0]  (!%p2875_p9), %s2869_s12, 2048, %s205_s14, [#allocation10], %s3491_s11, %s3491_s11, %s3493_s13  }
  0x32   : > { %s27_s16 = sadd.s32 1, %s2742_s28  ;;  %s30_s17 = sadd.s32 1, %s2746_s0 }
  0x33   : > { %p28_p5 = scmp.ge.s32.totalorder %s27_s16, 2  ;;  %s58_s18 = sadd.s32 1, %s2730_s25 }
  0x34   : > { %s110_s19 = sadd.s32 1, %s2718_s22  ;;  %p117_p6 = scmp.ne.s32.totalorder %s2718_s22, %s2714_s21 }
  0x35   : > { %s3546_s16 = smov (%p28_p5, %s27_s16), 0  ;;  %s3548_s17 = smov (!%p28_p5, %s30_s17), %s2746_s0 }
  0x36   : > { %3517 = sst [smem:[#allocation22_spill]] %s3546_s16  ;;  %s107_s20 = ssub.s32 %s2742_s28, %s3546_s16 }
  0x37   : > { %p118_p7 = scmp.eq.s32.totalorder %s2750_s29, 0  ;;  %p32_p13 = scmp.ge.s32.totalorder %s3548_s17, 2 }
  0x38   : > { %p108_p0 = scmp.eq.s32.totalorder %s107_s20, 0  ;;  %p2189_p2 = scmp.lt.s32.totalorder %s2750_s29, 4 }
  0x39   : > { %p119_p1 = por %p118_p7, %p117_p6  ;;  %s3550_s17 = smov (%p32_p13, %s3548_s17), 0 }
  0x3a   : > { %3518 = sst [smem:[#allocation23_spill]] %s3550_s17  ;;  %s55_s14 = ssub.s32 %s2746_s0, %s3550_s17 }
  0x3b   : > { %s2918_s12 = scalar_select %p108_p0, %s2718_s22, %s110_s19  }
  0x3c   : > { %s234_s23 = sand.u32 1, %s2750_s29   ;;  %p56_p3 = scmp.eq.s32.totalorder %s55_s14, 0 }
  0x3d   : > { %3519 = sst [smem:[#allocation24_spill]] %s2918_s12  ;;  %s236_s10 = sand.u32 1, %s2718_s22  }
  0x3e   : > { %s3500_s30 = sshll.u32 %s2742_s28, 11  ;;  %s1973_s13 = sshll.u32 %s236_s10, 7 }
  0x3f   : > { %s2926_s11 = scalar_select %p56_p3, %s2730_s25, %s58_s18  }
  0x40   : > { %s3521_s3 = sld [smem:[#allocation27_spill]]  ;;  %p2933_p4 = pnand %p2189_p2, %p119_p1 }
  0x41   : > { %3520 = sst [smem:[#allocation25_spill]] %s2926_s11  ;;  %s238_s19 = scalar_lea.vmem [#allocation13], %s1973_s13 }
  0x42   : > { %s3522_s16 = scalar_select %p2933_p4, 1, 0 }
  0x43   : > { %s245_s17 = sshll.u32 %s238_s19, 4  ;;  %s3523_s0 = sshll.u32 %s2738_s27, 11  ;;  %s246_s17 = int_to_ptr.vmem [resolvable:$true] %s245_s17 }
  0x44   : > { %s2942_s18 = scalar_lea.hbm %s3482_s2, %s3523_s0  ;;  %s2944_s10 = scalar_lea.sflag [#allocation10], %s234_s23 }
  0x45   : > { %p3503_p8 = pneg %p2933_p4  ;;  %s2581_s1 = scalar_lea.vmem %s246_s17, 2048 }
  0x46   : > { %s244_s20 = scalar_lea.hbm %s3521_s3, %s3500_s30  ;;  %p2582_p10 = scmp.ne.s32.totalorder %s246_s17, %s2581_s1 }
  0x47   : > { %s2755_s9 = smov [#allocation13]  }
  0x48   : > { %p2584_p12 = pnand %p2582_p10, %p3503_p8  ;;  %s2586_s30 = sshll.u32 %s2755_s9, 4  ;;  %s2587_s30 = int_to_ptr.vmem [resolvable:$false] %s2586_s30 }
  0x49   : > { %s2588_s19 = scalar_lea.vmem %s2587_s30, 4096  ;;  %p2589_p6 = scmp.lt.s32.totalorder %s246_s17, %s2587_s30 }
  0x4a   : > { %p2585_p5 = pneg %p2584_p12  ;;  %p2590_p7 = scmp.lt.s32.totalorder %s2588_s19, %s2581_s1 }
  0x4c   : > { %p2591_p13 = por %p2590_p7, %p2589_p6 }
  0x4e   : > { %p2592_p0 = pnand %p2591_p13, %p2585_p5 }
  0x50   : > { %2595 = shalt.err (!%p2592_p0)
}
  0x51   : > { %s3524_s24 = smov 8   ;;  %s3525_s0 = smov 128  }
  0x52   : > { %2185 = dma.hbm_to_vmem [thread:$0]  (!%p2933_p4), %s244_s20, 2048, %s246_s17, %s2944_s10, %s3525_s0, %s3525_s0, %s3524_s24  }
  0x53   : > { %s2756_s23 = smov [#allocation11]   ;;  %s3526_s9 = sshll.u32 %s2742_s28, 11 }
  0x54   : > { %s220_s14 = sshll.u32 %s2756_s23, 4  ;;  %s2962_s19 = scalar_lea.hbm %s3484_s4, %s3526_s9  ;;  %s221_s14 = int_to_ptr.vmem [resolvable:$true] %s220_s14 }
  0x55   : > { %s259_s3 = scalar_lea.vmem [#allocation14], %s1973_s13  ;;  %s2596_s25 = scalar_lea.hbm %s2942_s18, 2048 }
  0x56   : > { %s266_s11 = sshll.u32 %s259_s3, 4  ;;  %p2597_p1 = scmp.ne.s32.totalorder %s2942_s18, %s2596_s25  ;;  %s267_s11 = int_to_ptr.vmem [resolvable:$true] %s266_s11 }
  0x57   : > { %s2601_s17 = scalar_lea.hbm %s3482_s2, 4096  ;;  %p2602_p10 = scmp.lt.s32.totalorder %s2942_s18, %s3482_s2 }
  0x58   : > { %p2599_p2 = pnand %p2597_p1, %p2542_p11  ;;  %p2603_p12 = scmp.lt.s32.totalorder %s2601_s17, %s2596_s25 }
  0x5a   : > { %p2600_p3 = pneg %p2599_p2  ;;  %p2604_p5 = por %p2603_p12, %p2602_p10 }
  0x5c   : > { %p2605_p6 = pnand %p2604_p5, %p2600_p3 }
  0x5e   : > { %2608 = shalt.err (!%p2605_p6)
}
  0x5f   : > { %s2609_s13 = scalar_lea.vmem %s221_s14, 2048  ;;  %p2617_p1 = scmp.lt.s32.totalorder %s221_s14, %s221_s14 }
  0x60   : > { %p2610_p7 = scmp.ne.s32.totalorder %s221_s14, %s2609_s13  ;;  %p2618_p2 = scmp.lt.s32.totalorder %s2609_s13, %s2609_s13 }
  0x62   : > { %p2612_p13 = pnand %p2610_p7, %p2542_p11  ;;  %p2619_p8 = por %p2618_p2, %p2617_p1 }
  0x64   : > { %p2613_p0 = pneg %p2612_p13 }
  0x66   : > { %p2620_p4 = pnand %p2619_p8, %p2613_p0 }
  0x68   : > { %2623 = shalt.err (!%p2620_p4)
}
  0x69   : > { %2181 = dma.hbm_to_vmem [thread:$0]  (!%p2875_p9), %s2942_s18, 2048, %s221_s14, [#allocation12], %s3525_s0, %s3525_s0, %s3524_s24  }
  0x6a   : > { %s2637_s3 = scalar_lea.vmem %s267_s11, 2048  ;;  %p3527_p10 = scmp.ne.s32.totalorder %s3522_s16, 0 }
  0x6b   : > { %p2638_p3 = scmp.ne.s32.totalorder %s267_s11, %s2637_s3  ;;  %s2757_s22 = smov [#allocation14]  }
  0x6c   : > { %p3528_p12 = pneg %p3527_p10  ;;  %s2642_s25 = sshll.u32 %s2757_s22, 4  ;;  %s2643_s25 = int_to_ptr.vmem [resolvable:$false] %s2642_s25 }
  0x6d   : > { %s2644_s12 = scalar_lea.vmem %s2643_s25, 4096  ;;  %p2645_p4 = scmp.lt.s32.totalorder %s267_s11, %s2643_s25 }
  0x6e   : > { %p2640_p11 = pnand %p2638_p3, %p3528_p12  ;;  %p2646_p8 = scmp.lt.s32.totalorder %s2644_s12, %s2637_s3 }
  0x70   : > { %p2641_p5 = pneg %p2640_p11  ;;  %p2647_p6 = por %p2646_p8, %p2645_p4 }
  0x72   : > { %p2648_p7 = pnand %p2647_p6, %p2641_p5 }
  0x74   : > { %2651 = shalt.err (!%p2648_p7)
}
  0x75   : > { %2188 = dma.hbm_to_vmem [thread:$0]  (!%p3527_p10), %s2962_s19, 2048, %s267_s11, %s2944_s10, %s3525_s0, %s3525_s0, %s3524_s24  }
  0x76   : > { %p3529_p9 = scmp.ne.s32.totalorder %s3514_s8, 0 }
  0x77   : > { %p3530_p13 = scmp.ne.s32.totalorder (!%p3529_p9), %s3512_s6, 0 }
  0x78   : > { %278 = sbr.rel (%p3529_p9) target bundleno = 941 (0x3ad), region = 40 }
  0x7d   : > { %2697 = dma.done.wait (%p3530_p13), [#allocation10], 2048  }
  0x7e   : > { %2699 = vsyncadd (%p3530_p13), [#allocation10], 4294965248 }
  0x7f   : > { %2701 = dma.done.wait (%p3530_p13), [#allocation12], 2048  }
  0x80   : > { %2703 = vsyncadd (%p3530_p13), [#allocation12], 4294965248  ;;  %s3531_s15 = sadd.s32 4294967295, %s2750_s29   ;;  %s290_s16 = sand.u32 1, %s2714_s21  }
  0x81   : > { %s288_s11 = sand.u32 1, %s3531_s15   ;;  %s1980_s8 = sshll.u32 %s290_s16, 7 }
  0x82   : > { %s289_s18 = scalar_lea.sflag [#allocation10], %s288_s11  ;;  %s3008_s10 = scalar_lea.vmem [#allocation13], %s1980_s8 }
  0x83   : > { %p3532_p0 = scmp.ne.s32.totalorder %s3513_s7, 0 }
  0x85   : > { %2705 = dma.done.wait (%p3532_p0), %s289_s18, 4096  }
  0x86   : > { %2707 = vsyncadd (%p3532_p0), %s289_s18, 4294963200  ;;  %p336_p1 = scmp.lt.s32.totalorder %s2738_s27, 1  ;;  %s3021_s9 = scalar_lea.vmem [#allocation14], %s1980_s8 }
  0x87   : > { %p1983_p2 = scmp.ne.s32.totalorder %s2734_s26, 0 }
  0x88   : > { %s3552_s27 = smov (!%p336_p1, %s2738_s27), 1  ;;  %s3024_s30 = sld [smem:[#allocation8]] (!%p1983_p2) }
  0x89   : > { %s1982_s6 = sshll.u32 %s3552_s27, 3  ;;  %343 = sbr.rel (%p1983_p2) target bundleno = 191 (0xbf), region = 60 }
  0x8a   : > { %s3019_s14 = scalar_lea.vmem %s3485_s5, %s1982_s6 }
  0x8e   : > { %v2758_v0 = vmov -inf   ;;  %v345_v1 = vld [vmem:[#allocation9] sm:$0xff]  ;;  %v346_v2 = vld [vmem:[#allocation9 + $0x8] sm:$0xff]  ;;  %v347_v3 = vld [vmem:[#allocation9 + $0x10] sm:$0xff]  ;;  %v2759_v5 = vmov 0.0   ;;  %v3027_v16 = vstv %s3024_s30 }
  0x8f   : > { %442 = vst [vmem:[#allocation4 + $0x8] sm:$0xff] %v2758_v0  ;;  %443 = vst [vmem:[#allocation4] sm:$0xff] %v2758_v0  ;;  %v348_v4 = vld [vmem:[#allocation9 + $0x18] sm:$0xff]  ;;  %v349_v6 = vld [vmem:[#allocation9 + $0x20] sm:$0xff]  ;;  %v362_v20 = vmul.f32 %v3027_v16, %v345_v1  ;;  %v363_v21 = vmul.f32 %v3027_v16, %v346_v2  ;;  %v364_v22 = vmul.f32 %v3027_v16, %v347_v3 }
  0x90   : > { %444 = vst [vmem:[#allocation4 + $0x48] sm:$0xff] %v2758_v0  ;;  %445 = vst [vmem:[#allocation4 + $0x60] sm:$0xff] %v2758_v0  ;;  %v350_v7 = vld [vmem:[#allocation9 + $0x28] sm:$0xff]  ;;  %v351_v8 = vld [vmem:[#allocation9 + $0x30] sm:$0xff]  ;;  %v365_v23 = vmul.f32 %v3027_v16, %v348_v4  ;;  %v366_v27 = vmul.f32 %v3027_v16, %v349_v6 }
  0x91   : > { %446 = vst [vmem:[#allocation4 + $0x68] sm:$0xff] %v2758_v0  ;;  %447 = vst [vmem:[#allocation4 + $0x18] sm:$0xff] %v2758_v0  ;;  %v352_v9 = vld [vmem:[#allocation9 + $0x38] sm:$0xff]  ;;  %v353_v10 = vld [vmem:[#allocation9 + $0x40] sm:$0xff]  ;;  %v367_v28 = vmul.f32 %v3027_v16, %v350_v7  ;;  %v368_v29 = vmul.f32 %v3027_v16, %v351_v8 }
  0x92   : > { %448 = vst [vmem:[#allocation4 + $0x10] sm:$0xff] %v2758_v0  ;;  %449 = vst [vmem:[#allocation4 + $0x38] sm:$0xff] %v2758_v0  ;;  %v354_v11 = vld [vmem:[#allocation9 + $0x48] sm:$0xff]  ;;  %v355_v12 = vld [vmem:[#allocation9 + $0x50] sm:$0xff]  ;;  %v369_v30 = vmul.f32 %v3027_v16, %v352_v9  ;;  %v370_v34 = vmul.f32 %v3027_v16, %v353_v10 }
  0x93   : > { %450 = vst [vmem:[#allocation4 + $0x40] sm:$0xff] %v2758_v0  ;;  %451 = vst [vmem:[#allocation4 + $0x28] sm:$0xff] %v2758_v0  ;;  %v356_v13 = vld [vmem:[#allocation9 + $0x58] sm:$0xff]  ;;  %v357_v14 = vld [vmem:[#allocation9 + $0x60] sm:$0xff]  ;;  %v371_v35 = vmul.f32 %v3027_v16, %v354_v11  ;;  %v372_v36 = vmul.f32 %v3027_v16, %v355_v12 }
  0x94   : > { %452 = vst [vmem:[#allocation4 + $0x70] sm:$0xff] %v2758_v0  ;;  %453 = vst [vmem:[#allocation4 + $0x20] sm:$0xff] %v2758_v0  ;;  %v358_v15 = vld [vmem:[#allocation9 + $0x68] sm:$0xff]  ;;  %v359_v17 = vld [vmem:[#allocation9 + $0x70] sm:$0xff]  ;;  %v373_v37 = vmul.f32 %v3027_v16, %v356_v13  ;;  %v374_v41 = vmul.f32 %v3027_v16, %v357_v14 }
  0x95   : > { %454 = vst [vmem:[#allocation4 + $0x58] sm:$0xff] %v2758_v0  ;;  %455 = vst [vmem:[#allocation4 + $0x30] sm:$0xff] %v2758_v0  ;;  %v360_v18 = vld [vmem:[#allocation9 + $0x78] sm:$0xff]  ;;  %v394_v19 = vld [vmem:[#allocation11] sm:$0xff]  ;;  %v375_v42 = vmul.f32 %v3027_v16, %v358_v15  ;;  %v376_v43 = vmul.f32 %v3027_v16, %v359_v17 }
  0x96   : > { %456 = vst [vmem:[#allocation4 + $0x50] sm:$0xff] %v2758_v0  ;;  %457 = vst [vmem:[#allocation4 + $0x78] sm:$0xff] %v2758_v0  ;;  %v395_v24 = vld [vmem:[#allocation11 + $0x8] sm:$0xff]  ;;  %v396_v25 = vld [vmem:[#allocation11 + $0x10] sm:$0xff]  ;;  %v377_v44 = vmul.f32 %v3027_v16, %v360_v18  ;;  %v410_v48 = vmul.f32 %v394_v19, %v3027_v16 }
  0x97   : > { %474 = vst [vmem:[#allocation6 + $0x68] sm:$0xff] %v2758_v0  ;;  %475 = vst [vmem:[#allocation6 + $0x50] sm:$0xff] %v2758_v0  ;;  %v397_v26 = vld [vmem:[#allocation11 + $0x18] sm:$0xff]  ;;  %v398_v31 = vld [vmem:[#allocation11 + $0x20] sm:$0xff]  ;;  %v411_v49 = vmul.f32 %v395_v24, %v3027_v16  ;;  %v412_v50 = vmul.f32 %v396_v25, %v3027_v16 }
  0x98   : > { %476 = vst [vmem:[#allocation6 + $0x70] sm:$0xff] %v2758_v0  ;;  %477 = vst [vmem:[#allocation6 + $0x60] sm:$0xff] %v2758_v0  ;;  %v399_v32 = vld [vmem:[#allocation11 + $0x28] sm:$0xff]  ;;  %v400_v33 = vld [vmem:[#allocation11 + $0x30] sm:$0xff]  ;;  %v413_v51 = vmul.f32 %v397_v26, %v3027_v16  ;;  %v414_v55 = vmul.f32 %v398_v31, %v3027_v16 }
  0x99   : > { %478 = vst [vmem:[#allocation6 + $0x8] sm:$0xff] %v2758_v0  ;;  %479 = vst [vmem:[#allocation6 + $0x58] sm:$0xff] %v2758_v0  ;;  %v401_v38 = vld [vmem:[#allocation11 + $0x38] sm:$0xff]  ;;  %v402_v39 = vld [vmem:[#allocation11 + $0x40] sm:$0xff]  ;;  %v415_v56 = vmul.f32 %v399_v32, %v3027_v16  ;;  %v416_v57 = vmul.f32 %v400_v33, %v3027_v16 }
  0x9a   : > { %480 = vst [vmem:[#allocation6 + $0x18] sm:$0xff] %v2758_v0  ;;  %481 = vst [vmem:[#allocation6 + $0x30] sm:$0xff] %v2758_v0  ;;  %v403_v40 = vld [vmem:[#allocation11 + $0x48] sm:$0xff]  ;;  %v404_v45 = vld [vmem:[#allocation11 + $0x50] sm:$0xff]  ;;  %v417_v58 = vmul.f32 %v401_v38, %v3027_v16  ;;  %v418_v59 = vmul.f32 %v402_v39, %v3027_v16 }
  0x9b   : > { %482 = vst [vmem:[#allocation6 + $0x48] sm:$0xff] %v2758_v0  ;;  %483 = vst [vmem:[#allocation6 + $0x20] sm:$0xff] %v2758_v0  ;;  %v405_v46 = vld [vmem:[#allocation11 + $0x58] sm:$0xff]  ;;  %v406_v47 = vld [vmem:[#allocation11 + $0x60] sm:$0xff]  ;;  %v419_v60 = vmul.f32 %v403_v40, %v3027_v16  ;;  %v420_v61 = vmul.f32 %v404_v45, %v3027_v16 }
  0x9c   : > { %484 = vst [vmem:[#allocation6 + $0x10] sm:$0xff] %v2758_v0  ;;  %485 = vst [vmem:[#allocation6 + $0x40] sm:$0xff] %v2758_v0  ;;  %v407_v52 = vld [vmem:[#allocation11 + $0x68] sm:$0xff]  ;;  %v408_v53 = vld [vmem:[#allocation11 + $0x70] sm:$0xff]  ;;  %v421_v62 = vmul.f32 %v405_v46, %v3027_v16  ;;  %v422_v63 = vmul.f32 %v406_v47, %v3027_v16 }
  0x9d   : > { %486 = vst [vmem:[#allocation6] sm:$0xff] %v2758_v0  ;;  %487 = vst [vmem:[#allocation6 + $0x78] sm:$0xff] %v2758_v0  ;;  %v409_v54 = vld [vmem:[#allocation11 + $0x78] sm:$0xff]  ;;  %v424_v1 = vmul.f32 %v408_v53, %v3027_v16 }
  0x9e   : > { %488 = vst [vmem:[#allocation6 + $0x38] sm:$0xff] %v2758_v0  ;;  %489 = vst [vmem:[#allocation6 + $0x28] sm:$0xff] %v2758_v0  ;;  %v423_v0 = vmul.f32 %v407_v52, %v3027_v16  ;;  %v425_v2 = vmul.f32 %v409_v54, %v3027_v16 }
  0x9f   : > { %458 = vst [vmem:[#allocation5 + $0x18] sm:$0xff] %v2759_v5  ;;  %459 = vst [vmem:[#allocation5 + $0x38] sm:$0xff] %v2759_v5 }
  0xa0   : > { %460 = vst [vmem:[#allocation5 + $0x48] sm:$0xff] %v2759_v5  ;;  %461 = vst [vmem:[#allocation5 + $0x40] sm:$0xff] %v2759_v5 }
  0xa1   : > { %462 = vst [vmem:[#allocation5 + $0x28] sm:$0xff] %v2759_v5  ;;  %463 = vst [vmem:[#allocation5] sm:$0xff] %v2759_v5 }
  0xa2   : > { %464 = vst [vmem:[#allocation5 + $0x8] sm:$0xff] %v2759_v5  ;;  %465 = vst [vmem:[#allocation5 + $0x70] sm:$0xff] %v2759_v5 }
  0xa3   : > { %466 = vst [vmem:[#allocation5 + $0x68] sm:$0xff] %v2759_v5  ;;  %467 = vst [vmem:[#allocation5 + $0x60] sm:$0xff] %v2759_v5 }
  0xa4   : > { %468 = vst [vmem:[#allocation5 + $0x78] sm:$0xff] %v2759_v5  ;;  %469 = vst [vmem:[#allocation5 + $0x30] sm:$0xff] %v2759_v5 }
  0xa5   : > { %470 = vst [vmem:[#allocation5 + $0x50] sm:$0xff] %v2759_v5  ;;  %471 = vst [vmem:[#allocation5 + $0x20] sm:$0xff] %v2759_v5 }
  0xa6   : > { %472 = vst [vmem:[#allocation5 + $0x58] sm:$0xff] %v2759_v5  ;;  %473 = vst [vmem:[#allocation5 + $0x10] sm:$0xff] %v2759_v5 }
  0xa7   : > { %490 = vst [vmem:[#allocation7 + $0x18] sm:$0xff] %v2759_v5  ;;  %491 = vst [vmem:[#allocation7 + $0x70] sm:$0xff] %v2759_v5 }
  0xa8   : > { %492 = vst [vmem:[#allocation7 + $0x8] sm:$0xff] %v2759_v5  ;;  %493 = vst [vmem:[#allocation7] sm:$0xff] %v2759_v5 }
  0xa9   : > { %494 = vst [vmem:[#allocation7 + $0x38] sm:$0xff] %v2759_v5  ;;  %495 = vst [vmem:[#allocation7 + $0x40] sm:$0xff] %v2759_v5 }
  0xaa   : > { %496 = vst [vmem:[#allocation7 + $0x20] sm:$0xff] %v2759_v5  ;;  %497 = vst [vmem:[#allocation7 + $0x58] sm:$0xff] %v2759_v5 }
  0xab   : > { %498 = vst [vmem:[#allocation7 + $0x78] sm:$0xff] %v2759_v5  ;;  %499 = vst [vmem:[#allocation7 + $0x10] sm:$0xff] %v2759_v5 }
  0xac   : > { %500 = vst [vmem:[#allocation7 + $0x60] sm:$0xff] %v2759_v5  ;;  %501 = vst [vmem:[#allocation7 + $0x48] sm:$0xff] %v2759_v5 }
  0xad   : > { %502 = vst [vmem:[#allocation7 + $0x68] sm:$0xff] %v2759_v5  ;;  %503 = vst [vmem:[#allocation7 + $0x28] sm:$0xff] %v2759_v5 }
  0xae   : > { %504 = vst [vmem:[#allocation7 + $0x50] sm:$0xff] %v2759_v5  ;;  %505 = vst [vmem:[#allocation7 + $0x30] sm:$0xff] %v2759_v5 }
  0xaf   : > { %378 = vst [vmem:[#allocation2 + $0x30] sm:$0xff] %v362_v20  ;;  %379 = vst [vmem:[#allocation2] sm:$0xff] %v363_v21 }
  0xb0   : > { %380 = vst [vmem:[#allocation2 + $0x58] sm:$0xff] %v364_v22  ;;  %381 = vst [vmem:[#allocation2 + $0x18] sm:$0xff] %v365_v23 }
  0xb1   : > { %382 = vst [vmem:[#allocation2 + $0x50] sm:$0xff] %v366_v27  ;;  %383 = vst [vmem:[#allocation2 + $0x68] sm:$0xff] %v367_v28 }
  0xb2   : > { %384 = vst [vmem:[#allocation2 + $0x8] sm:$0xff] %v368_v29  ;;  %385 = vst [vmem:[#allocation2 + $0x48] sm:$0xff] %v369_v30 }
  0xb3   : > { %386 = vst [vmem:[#allocation2 + $0x40] sm:$0xff] %v370_v34  ;;  %387 = vst [vmem:[#allocation2 + $0x20] sm:$0xff] %v371_v35 }
  0xb4   : > { %388 = vst [vmem:[#allocation2 + $0x10] sm:$0xff] %v372_v36  ;;  %389 = vst [vmem:[#allocation2 + $0x38] sm:$0xff] %v373_v37 }
  0xb5   : > { %390 = vst [vmem:[#allocation2 + $0x60] sm:$0xff] %v374_v41  ;;  %391 = vst [vmem:[#allocation2 + $0x70] sm:$0xff] %v375_v42 }
  0xb6   : > { %392 = vst [vmem:[#allocation2 + $0x78] sm:$0xff] %v376_v43  ;;  %393 = vst [vmem:[#allocation2 + $0x28] sm:$0xff] %v377_v44 }
  0xb7   : > { %426 = vst [vmem:[#allocation3 + $0x28] sm:$0xff] %v410_v48  ;;  %427 = vst [vmem:[#allocation3 + $0x68] sm:$0xff] %v411_v49 }
  0xb8   : > { %428 = vst [vmem:[#allocation3 + $0x10] sm:$0xff] %v412_v50  ;;  %429 = vst [vmem:[#allocation3 + $0x40] sm:$0xff] %v413_v51 }
  0xb9   : > { %430 = vst [vmem:[#allocation3 + $0x48] sm:$0xff] %v414_v55  ;;  %431 = vst [vmem:[#allocation3 + $0x30] sm:$0xff] %v415_v56 }
  0xba   : > { %432 = vst [vmem:[#allocation3 + $0x70] sm:$0xff] %v416_v57  ;;  %433 = vst [vmem:[#allocation3 + $0x38] sm:$0xff] %v417_v58 }
  0xbb   : > { %434 = vst [vmem:[#allocation3 + $0x20] sm:$0xff] %v418_v59  ;;  %435 = vst [vmem:[#allocation3 + $0x78] sm:$0xff] %v419_v60 }
  0xbc   : > { %436 = vst [vmem:[#allocation3 + $0x18] sm:$0xff] %v420_v61  ;;  %437 = vst [vmem:[#allocation3 + $0x58] sm:$0xff] %v421_v62 }
  0xbd   : > { %438 = vst [vmem:[#allocation3] sm:$0xff] %v422_v63  ;;  %439 = vst [vmem:[#allocation3 + $0x8] sm:$0xff] %v423_v0 }
  0xbe   : > { %440 = vst [vmem:[#allocation3 + $0x60] sm:$0xff] %v424_v1  ;;  %441 = vst [vmem:[#allocation3 + $0x50] sm:$0xff] %v425_v2 }
  0xbf PF: > { %v537_v3 = vld [vmem:[%s3008_s10 + $0x78] sm:$0xff]  ;;  %v536_v5 = vld [vmem:[%s3008_s10 + $0x70] sm:$0xff]  ;;  %v535_v7 = vld [vmem:[%s3008_s10 + $0x68] sm:$0xff]  ;;  %p1984_p3 = scmp.ne.s32.totalorder %s2734_s26, 1 }
  0xc0   : > { %v922_v4 = vld [vmem:[%s3021_s9 + $0x78] sm:$0xff]  ;;  %2055 = vmatprep.subr.mxu0 %v537_v3  ;;  %v921_v6 = vld [vmem:[%s3021_s9 + $0x70] sm:$0xff]  ;;  %v920_v8 = vld [vmem:[%s3021_s9 + $0x68] sm:$0xff] }
  0xc1   : > { %2111 = vmatprep.subr.mxu1 %v922_v4  ;;  %2056 = vmatpush3.xpose.msra.mxu0 %v537_v3  ;;  %v534_v9 = vld [vmem:[%s3008_s10 + $0x60] sm:$0xff]  ;;  %v506_v11 = vld [vmem:[#allocation2 + $0x30] sm:$0xff]  ;;  %v891_v12 = vld [vmem:[#allocation3 + $0x28] sm:$0xff] }
  0xc2   : > { %2112 = vmatpush3.xpose.msra.mxu1 %v922_v4  ;;  %2057 = vmatprep.subr.mxu0 %v536_v5  ;;  %v919_v10 = vld [vmem:[%s3021_s9 + $0x60] sm:$0xff]  ;;  %v533_v13 = vld [vmem:[%s3008_s10 + $0x58] sm:$0xff]  ;;  %v532_v15 = vld [vmem:[%s3008_s10 + $0x50] sm:$0xff] }
  0xc3   : > { %2113 = vmatprep.subr.mxu1 %v921_v6  ;;  %v918_v14 = vld [vmem:[%s3021_s9 + $0x58] sm:$0xff]  ;;  %2087 = vmatprep.mubr.f32.mxu0 %v506_v11  ;;  %v917_v16 = vld [vmem:[%s3021_s9 + $0x50] sm:$0xff]  ;;  %v531_v17 = vld [vmem:[%s3008_s10 + $0x48] sm:$0xff] }
  0xc4   : > { %2143 = vmatprep.mubr.f32.mxu1 %v891_v12  ;;  %v916_v18 = vld [vmem:[%s3021_s9 + $0x48] sm:$0xff]  ;;  %v530_v19 = vld [vmem:[%s3008_s10 + $0x40] sm:$0xff]  ;;  %v529_v21 = vld [vmem:[%s3008_s10 + $0x38] sm:$0xff] }
  0xc5   : > { %2058 = vmatpush3.xpose.msra.mxu0 %v536_v5  ;;  %v915_v20 = vld [vmem:[%s3021_s9 + $0x40] sm:$0xff]  ;;  %v914_v22 = vld [vmem:[%s3021_s9 + $0x38] sm:$0xff]  ;;  %v528_v23 = vld [vmem:[%s3008_s10 + $0x30] sm:$0xff] }
  0xc6   : > { %2114 = vmatpush3.xpose.msra.mxu1 %v921_v6  ;;  %2059 = vmatprep.subr.mxu0 %v535_v7  ;;  %v913_v24 = vld [vmem:[%s3021_s9 + $0x30] sm:$0xff]  ;;  %v527_v25 = vld [vmem:[%s3008_s10 + $0x28] sm:$0xff]  ;;  %v526_v27 = vld [vmem:[%s3008_s10 + $0x20] sm:$0xff] }
  0xc7   : > { %2115 = vmatprep.subr.mxu1 %v920_v8  ;;  %v912_v26 = vld [vmem:[%s3021_s9 + $0x28] sm:$0xff]  ;;  %v911_v28 = vld [vmem:[%s3021_s9 + $0x20] sm:$0xff]  ;;  %v525_v29 = vld [vmem:[%s3008_s10 + $0x18] sm:$0xff] }
  0xc8   : > { %v910_v30 = vld [vmem:[%s3021_s9 + $0x18] sm:$0xff]  ;;  %v524_v31 = vld [vmem:[%s3008_s10 + $0x10] sm:$0xff]  ;;  %v523_v33 = vld [vmem:[%s3008_s10 + $0x8] sm:$0xff] }
  0xc9   : > { %2060 = vmatpush3.xpose.msra.mxu0 %v535_v7  ;;  %v909_v32 = vld [vmem:[%s3021_s9 + $0x10] sm:$0xff]  ;;  %v908_v34 = vld [vmem:[%s3021_s9 + $0x8] sm:$0xff]  ;;  %v522_v35 = vld [vmem:[%s3008_s10] sm:$0xff] }
  0xca   : > { %2116 = vmatpush3.xpose.msra.mxu1 %v920_v8  ;;  %2061 = vmatprep.subr.mxu0 %v534_v9  ;;  %v907_v36 = vld [vmem:[%s3021_s9] sm:$0xff]  ;;  %v892_v38 = vld [vmem:[#allocation3 + $0x68] sm:$0xff]  ;;  %v508_v39 = vld [vmem:[#allocation2 + $0x58] sm:$0xff] }
  0xcb   : > { %2117 = vmatprep.subr.mxu1 %v919_v10  ;;  %v507_v37 = vld [vmem:[#allocation2] sm:$0xff]  ;;  %v893_v40 = vld [vmem:[#allocation3 + $0x10] sm:$0xff]  ;;  %v509_v41 = vld [vmem:[#allocation2 + $0x18] sm:$0xff] }
  0xcc   : > { %v894_v42 = vld [vmem:[#allocation3 + $0x40] sm:$0xff]  ;;  %v510_v43 = vld [vmem:[#allocation2 + $0x50] sm:$0xff]  ;;  %v895_v44 = vld [vmem:[#allocation3 + $0x48] sm:$0xff] }
  0xcd   : > { %2062 = vmatpush3.xpose.msra.mxu0 %v534_v9  ;;  %v511_v45 = vld [vmem:[#allocation2 + $0x68] sm:$0xff]  ;;  %v896_v46 = vld [vmem:[#allocation3 + $0x30] sm:$0xff]  ;;  %v898_v50 = vld [vmem:[#allocation3 + $0x38] sm:$0xff] }
  0xce   : > { %2118 = vmatpush3.xpose.msra.mxu1 %v919_v10  ;;  %2063 = vmatprep.subr.mxu0 %v533_v13  ;;  %v512_v47 = vld [vmem:[#allocation2 + $0x8] sm:$0xff]  ;;  %v897_v48 = vld [vmem:[#allocation3 + $0x70] sm:$0xff]  ;;  %v514_v51 = vld [vmem:[#allocation2 + $0x40] sm:$0xff] }
  0xcf   : > { %2119 = vmatprep.subr.mxu1 %v918_v14  ;;  %v513_v49 = vld [vmem:[#allocation2 + $0x48] sm:$0xff]  ;;  %v899_v52 = vld [vmem:[#allocation3 + $0x20] sm:$0xff]  ;;  %v900_v54 = vld [vmem:[#allocation3 + $0x78] sm:$0xff] }
  0xd0   : > { %v515_v53 = vld [vmem:[#allocation2 + $0x20] sm:$0xff]  ;;  %v516_v55 = vld [vmem:[#allocation2 + $0x10] sm:$0xff]  ;;  %v901_v56 = vld [vmem:[#allocation3 + $0x18] sm:$0xff] }
  0xd1   : > { %2064 = vmatpush3.xpose.msra.mxu0 %v533_v13  ;;  %v517_v57 = vld [vmem:[#allocation2 + $0x38] sm:$0xff]  ;;  %v518_v59 = vld [vmem:[#allocation2 + $0x60] sm:$0xff]  ;;  %v519_v61 = vld [vmem:[#allocation2 + $0x70] sm:$0xff] }
  0xd2   : > { %2120 = vmatpush3.xpose.msra.mxu1 %v918_v14  ;;  %2065 = vmatprep.subr.mxu0 %v532_v15  ;;  %v902_v58 = vld [vmem:[#allocation3 + $0x58] sm:$0xff]  ;;  %v903_v60 = vld [vmem:[#allocation3] sm:$0xff]  ;;  %v904_v62 = vld [vmem:[#allocation3 + $0x8] sm:$0xff] }
  0xd3   : > { %2121 = vmatprep.subr.mxu1 %v917_v16  ;;  %v520_v63 = vld [vmem:[#allocation2 + $0x78] sm:$0xff]  ;;  %v905_v0 = vld [vmem:[#allocation3 + $0x60] sm:$0xff]  ;;  %v521_v1 = vld [vmem:[#allocation2 + $0x28] sm:$0xff] }
  0xd4   : > { %v906_v2 = vld [vmem:[#allocation3 + $0x50] sm:$0xff]  ;;  %v684_v3 = vld [vmem:[#allocation4] sm:$0xff]  ;;  %v683_v9 = vld [vmem:[#allocation4 + $0x8] sm:$0xff] }
  0xd5   : > { %2066 = vmatpush3.xpose.msra.mxu0 %v532_v15  ;;  %v1069_v4 = vld [vmem:[#allocation6 + $0x50] sm:$0xff]  ;;  %v1068_v10 = vld [vmem:[#allocation6 + $0x68] sm:$0xff]  ;;  %v686_v13 = vld [vmem:[#allocation4 + $0x60] sm:$0xff] }
  0xd6   : > { %2122 = vmatpush3.xpose.msra.mxu1 %v917_v16  ;;  %2067 = vmatprep.subr.mxu0 %v531_v17 }
  0xd7   : > { %2123 = vmatprep.subr.mxu1 %v916_v18 }
  0xd9   : > { %2068 = vmatpush3.xpose.msra.mxu0 %v531_v17 }
  0xda   : > { %2124 = vmatpush3.xpose.msra.mxu1 %v916_v18  ;;  %2069 = vmatprep.subr.mxu0 %v530_v19 }
  0xdb   : > { %2125 = vmatprep.subr.mxu1 %v915_v20 }
  0xdd   : > { %2070 = vmatpush3.xpose.msra.mxu0 %v530_v19 }
  0xde   : > { %2126 = vmatpush3.xpose.msra.mxu1 %v915_v20  ;;  %2071 = vmatprep.subr.mxu0 %v529_v21 }
  0xdf   : > { %2127 = vmatprep.subr.mxu1 %v914_v22 }
  0xe1   : > { %2072 = vmatpush3.xpose.msra.mxu0 %v529_v21 }
  0xe2   : > { %2128 = vmatpush3.xpose.msra.mxu1 %v914_v22  ;;  %2073 = vmatprep.subr.mxu0 %v528_v23 }
  0xe3   : > { %2129 = vmatprep.subr.mxu1 %v913_v24 }
  0xe5   : > { %2074 = vmatpush3.xpose.msra.mxu0 %v528_v23 }
  0xe6   : > { %2130 = vmatpush3.xpose.msra.mxu1 %v913_v24  ;;  %2075 = vmatprep.subr.mxu0 %v527_v25 }
  0xe7   : > { %2131 = vmatprep.subr.mxu1 %v912_v26 }
  0xe9   : > { %2076 = vmatpush3.xpose.msra.mxu0 %v527_v25 }
  0xea   : > { %2132 = vmatpush3.xpose.msra.mxu1 %v912_v26  ;;  %2077 = vmatprep.subr.mxu0 %v526_v27 }
  0xeb   : > { %2133 = vmatprep.subr.mxu1 %v911_v28 }
  0xed   : > { %2078 = vmatpush3.xpose.msra.mxu0 %v526_v27 }
  0xee   : > { %2134 = vmatpush3.xpose.msra.mxu1 %v911_v28  ;;  %2079 = vmatprep.subr.mxu0 %v525_v29 }
  0xef   : > { %2135 = vmatprep.subr.mxu1 %v910_v30 }
  0xf1   : > { %2080 = vmatpush3.xpose.msra.mxu0 %v525_v29 }
  0xf2   : > { %2136 = vmatpush3.xpose.msra.mxu1 %v910_v30  ;;  %2081 = vmatprep.subr.mxu0 %v524_v31  ;;  %v1071_v30 = vld [vmem:[#allocation6 + $0x60] sm:$0xff] }
  0xf3   : > { %2137 = vmatprep.subr.mxu1 %v909_v32 }
  0xf5   : > { %2082 = vmatpush3.xpose.msra.mxu0 %v524_v31 }
  0xf6   : > { %2138 = vmatpush3.xpose.msra.mxu1 %v909_v32  ;;  %2083 = vmatprep.subr.mxu0 %v523_v33  ;;  %v685_v32 = vld [vmem:[#allocation4 + $0x48] sm:$0xff] }
  0xf7   : > { %2139 = vmatprep.subr.mxu1 %v908_v34 }
  0xf9   : > { %2084 = vmatpush3.xpose.msra.mxu0 %v523_v33 }
  0xfa   : > { %2140 = vmatpush3.xpose.msra.mxu1 %v908_v34  ;;  %2085 = vmatprep.subr.mxu0 %v522_v35  ;;  %v1070_v34 = vld [vmem:[#allocation6 + $0x70] sm:$0xff] }
  0xfb   : > { %2141 = vmatprep.subr.mxu1 %v907_v36 }
  0xfd   : > { %2086 = vmatpush3.xpose.msra.mxu0 %v522_v35 }
  0xfe   : > { %2142 = vmatpush3.xpose.msra.mxu1 %v907_v36 }
 0x100   : > { %2088 = vmatmul.mubr.f32.vlgmr.msra.gmra.mxu0 %v507_v37 }
 0x101   : > { %2144 = vmatmul.mubr.f32.vlgmr.msra.gmra.mxu1 %v892_v38  ;;  %2090 = vmatprep.mubr.f32.mxu0 %v508_v39  ;;  %v688_v38 = vld [vmem:[#allocation4 + $0x18] sm:$0xff] }
 0x102   : > { %2146 = vmatprep.mubr.f32.mxu1 %v893_v40  ;;  %v3093_v39 = vld [vmem:[#allocation6 + $0x58] sm:$0xff]  ;;  %v3095_v40 = vld [vmem:[#allocation4 + $0x68] sm:$0xff] }
 0x104   : > { %2091 = vmatmul.mubr.f32.gmra.mxu0 %v509_v41 }
 0x105   : > { %2147 = vmatmul.mubr.f32.gmra.mxu1 %v894_v42  ;;  %2093 = vmatprep.mubr.f32.mxu0 %v510_v43 }
 0x106   : > { %2149 = vmatprep.mubr.f32.mxu1 %v895_v44 }
 0x108   : > { %2094 = vmatmul.mubr.f32.gmra.mxu0 %v511_v45 }
 0x109   : > { %2150 = vmatmul.mubr.f32.gmra.mxu1 %v896_v46  ;;  %2096 = vmatprep.mubr.f32.mxu0 %v512_v47 }
 0x10a   : > { %2152 = vmatprep.mubr.f32.mxu1 %v897_v48 }
 0x10c   : > { %2097 = vmatmul.mubr.f32.gmra.mxu0 %v513_v49 }
 0x10d   : > { %2153 = vmatmul.mubr.f32.gmra.mxu1 %v898_v50  ;;  %2099 = vmatprep.mubr.f32.mxu0 %v514_v51 }
 0x10e   : > { %2155 = vmatprep.mubr.f32.mxu1 %v899_v52 }
 0x110   : > { %2100 = vmatmul.mubr.f32.gmra.mxu0 %v515_v53 }
 0x111   : > { %2156 = vmatmul.mubr.f32.gmra.mxu1 %v900_v54  ;;  %2102 = vmatprep.mubr.f32.mxu0 %v516_v55 }
 0x112   : > { %2158 = vmatprep.mubr.f32.mxu1 %v901_v56 }
 0x114   : > { %2103 = vmatmul.mubr.f32.gmra.mxu0 %v517_v57 }
 0x115   : > { %2159 = vmatmul.mubr.f32.gmra.mxu1 %v902_v58  ;;  %2105 = vmatprep.mubr.f32.mxu0 %v518_v59 }
 0x116   : > { %2161 = vmatprep.mubr.f32.mxu1 %v903_v60 }
 0x118   : > { %2106 = vmatmul.mubr.f32.gmra.mxu0 %v519_v61 }
 0x119   : > { %2162 = vmatmul.mubr.f32.gmra.mxu1 %v904_v62  ;;  %2108 = vmatprep.mubr.f32.mxu0 %v520_v63 }
 0x11a   : > { %2164 = vmatprep.mubr.f32.mxu1 %v905_v0 }
 0x11c   : > { %2109 = vmatmul.mubr.f32.gmra.mxu0 %v521_v1 }
 0x11d   : > { %2165 = vmatmul.mubr.f32.gmra.mxu1 %v906_v2 }
 0x1c0   : > { %v2089_v5 = vpop.f32.mrf.mxu0 }
 0x1c1   : > { %v2145_v6 = vpop.f32.mrf.mxu1  ;;  %v700_v7 = vmax.f32 %v684_v3, %v2089_v5 }
 0x1c2   : > { %v1085_v8 = vmax.f32 %v1069_v4, %v2145_v6  ;;  %v604_v11 = vpop.f32.mrf.mxu0 }
 0x1c3   : > { %v989_v12 = vpop.f32.mrf.mxu1  ;;  %v732_v14 = vsub.f32 %v684_v3, %v700_v7  ;;  %v796_v15 = vsub.f32 %v2089_v5, %v700_v7  ;;  %876 = vst [vmem:[#allocation4] sm:$0xff] %v700_v7  ;;  %v699_v18 = vmax.f32 %v683_v9, %v604_v11  ;;  %v716_v7 = vld [vmem:[#allocation5 + $0x38] sm:$0xff] }
 0x1c4   : > { %v1117_v16 = vsub.f32 %v1069_v4, %v1085_v8  ;;  %v1181_v17 = vsub.f32 %v2145_v6, %v1085_v8  ;;  %1261 = vst [vmem:[#allocation6 + $0x50] sm:$0xff] %v1085_v8  ;;  %v1084_v19 = vmax.f32 %v1068_v10, %v989_v12  ;;  %v2092_v20 = vpop.f32.mrf.mxu0 }
 0x1c5   : > { %v2148_v21 = vpop.f32.mrf.mxu1  ;;  %v749_v22 = vmul.f32 1.442695, %v732_v14  ;;  %v813_v23 = vmul.f32 1.442695, %v796_v15  ;;  %v702_v25 = vmax.f32 %v686_v13, %v2092_v20  ;;  %v731_v27 = vsub.f32 %v683_v9, %v699_v18  ;;  %875 = vst [vmem:[#allocation4 + $0x8] sm:$0xff] %v699_v18 }
 0x1c6   : > { %v1134_v24 = vmul.f32 1.442695, %v1117_v16  ;;  %v1198_v26 = vmul.f32 1.442695, %v1181_v17  ;;  %v795_v28 = vsub.f32 %v604_v11, %v699_v18  ;;  %v1116_v29 = vsub.f32 %v1068_v10, %v1084_v19  ;;  %1260 = vst [vmem:[#allocation6 + $0x68] sm:$0xff] %v1084_v19  ;;  %v614_v31 = vpop.f32.mrf.mxu0  ;;  %v1072_v11 = vld [vmem:[#allocation6 + $0x8] sm:$0xff] }
 0x1c7   : > { %v999_v33 = vpop.f32.mrf.mxu1  ;;  %2284 = vpow2.f32 %v749_v22  ;;  %v1180_v35 = vsub.f32 %v989_v12, %v1084_v19  ;;  %v734_v36 = vsub.f32 %v686_v13, %v702_v25  ;;  %v798_v37 = vsub.f32 %v2092_v20, %v702_v25  ;;  %878 = vst [vmem:[#allocation4 + $0x60] sm:$0xff] %v702_v25  ;;  %v690_v12 = vld [vmem:[#allocation4 + $0x38] sm:$0xff]  ;;  %v3107_v16 = vld [vmem:[#allocation6 + $0x30] sm:$0xff] }
 0x1c8   : > { %2286 = vpow2.f32 %v813_v23  ;;  %v747_v41 = vmul.f32 1.442695, %v731_v27  ;;  %v811_v42 = vmul.f32 1.442695, %v795_v28  ;;  %v1132_v43 = vmul.f32 1.442695, %v1116_v29  ;;  %v2095_v44 = vpop.f32.mrf.mxu0 }
 0x1c9   : > { %v2151_v45 = vpop.f32.mrf.mxu1  ;;  %2288 = vpow2.f32 %v1134_v24  ;;  %v1196_v46 = vmul.f32 1.442695, %v1180_v35  ;;  %v753_v47 = vmul.f32 1.442695, %v734_v36  ;;  %v817_v48 = vmul.f32 1.442695, %v798_v37 }
 0x1ca   : > { %2290 = vpow2.f32 %v1198_v26  ;;  %v1087_v49 = vmax.f32 %v1071_v30, %v2148_v21  ;;  %v701_v50 = vmax.f32 %v685_v32, %v614_v31  ;;  %v1086_v51 = vmax.f32 %v1070_v34, %v999_v33  ;;  %v624_v52 = vpop.f32.mrf.mxu0  ;;  %v3109_v17 = vld [vmem:[#allocation4 + $0x10] sm:$0xff]  ;;  %v3111_v18 = vld [vmem:[#allocation6 + $0x18] sm:$0xff] }
 0x1cb   : > { %v3097_v53 = vpop.f32.mrf.mxu1  ;;  %2292 = vpow2.f32 %v747_v41  ;;  %v704_v54 = vmax.f32 %v688_v38, %v2095_v44  ;;  %v1089_v55 = vmax.f32 %v3093_v39, %v2151_v45  ;;  %v703_v56 = vmax.f32 %v3095_v40, %v624_v52  ;;  %v1101_v28 = vld [vmem:[#allocation7 + $0x70] sm:$0xff]  ;;  %v715_v37 = vld [vmem:[#allocation5 + $0x18] sm:$0xff] }
 0x1cc   : > { %2294 = vpow2.f32 %v811_v42  ;;  %v1119_v57 = vsub.f32 %v1071_v30, %v1087_v49  ;;  %v1183_v58 = vsub.f32 %v2148_v21, %v1087_v49  ;;  %1263 = vst [vmem:[#allocation6 + $0x60] sm:$0xff] %v1087_v49  ;;  %v733_v59 = vsub.f32 %v685_v32, %v701_v50  ;;  %877 = vst [vmem:[#allocation4 + $0x48] sm:$0xff] %v701_v50  ;;  %v3101_v2 = vpop.f32.mrf.mxu0 }
 0x1cd   : > { %1262 = vst [vmem:[#allocation6 + $0x70] sm:$0xff] %v1086_v51  ;;  %2296 = vpow2.f32 %v1132_v43  ;;  %v797_v60 = vsub.f32 %v614_v31, %v701_v50  ;;  %v1118_v61 = vsub.f32 %v1070_v34, %v1086_v51  ;;  %v1182_v62 = vsub.f32 %v999_v33, %v1086_v51  ;;  %880 = vst [vmem:[#allocation4 + $0x18] sm:$0xff] %v704_v54  ;;  %v3103_v3 = vpop.f32.mrf.mxu1 }
 0x1ce   : > { %1265 = vst [vmem:[#allocation6 + $0x58] sm:$0xff] %v1089_v55  ;;  %879 = vst [vmem:[#allocation4 + $0x68] sm:$0xff] %v703_v56  ;;  %2298 = vpow2.f32 %v1196_v46  ;;  %v1138_v63 = vmul.f32 1.442695, %v1119_v57  ;;  %v1202_v0 = vmul.f32 1.442695, %v1183_v58  ;;  %v736_v8 = vsub.f32 %v688_v38, %v704_v54  ;;  %v3113_v22 = vpop.f32.mrf.mxu0 }
 0x1cf   : > { %v751_v1 = vmul.f32 1.442695, %v733_v59  ;;  %2300 = vpow2.f32 %v753_v47  ;;  %v815_v4 = vmul.f32 1.442695, %v797_v60  ;;  %v1136_v5 = vmul.f32 1.442695, %v1118_v61  ;;  %v3115_v23 = vpop.f32.mrf.mxu1 }
 0x1d0   : > { %v1200_v6 = vmul.f32 1.442695, %v1182_v62  ;;  %2302 = vpow2.f32 %v817_v48  ;;  %v800_v9 = vsub.f32 %v2095_v44, %v704_v54  ;;  %v1121_v10 = vsub.f32 %v3093_v39, %v1089_v55  ;;  %v1100_v44 = vld [vmem:[#allocation7 + $0x18] sm:$0xff]  ;;  %v1103_v62 = vld [vmem:[#allocation7] sm:$0xff] }
 0x1d1   : > { %2304 = vpow2.f32 %v1138_v63  ;;  %v1185_v13 = vsub.f32 %v2151_v45, %v1089_v55  ;;  %v735_v14 = vsub.f32 %v3095_v40, %v703_v56  ;;  %v799_v15 = vsub.f32 %v624_v52, %v703_v56  ;;  %v718_v55 = vld [vmem:[#allocation5 + $0x40] sm:$0xff] }
 0x1d2   : > { %2306 = vpow2.f32 %v1202_v0  ;;  %v757_v19 = vmul.f32 1.442695, %v736_v8  ;;  %v821_v20 = vmul.f32 1.442695, %v800_v9  ;;  %v1142_v21 = vmul.f32 1.442695, %v1121_v10  ;;  %v2101_v0 = vpop.f32.mrf.mxu0  ;;  %v2157_v8 = vpop.f32.mrf.mxu1 }
 0x1d3   : > { %2308 = vpow2.f32 %v751_v1  ;;  %v1206_v24 = vmul.f32 1.442695, %v1185_v13  ;;  %v755_v25 = vmul.f32 1.442695, %v735_v14  ;;  %v819_v26 = vmul.f32 1.442695, %v799_v15 }
 0x1d4   : > { %v2285_v27 = vpop.eup %2284  ;;  %2310 = vpow2.f32 %v815_v4  ;;  %v1088_v29 = vmax.f32 %v1072_v11, %v3097_v53  ;;  %v706_v30 = vmax.f32 %v690_v12, %v3101_v2  ;;  %v1091_v31 = vmax.f32 %v3107_v16, %v3103_v3  ;;  %v692_v1 = vld [vmem:[#allocation4 + $0x28] sm:$0xff] }
 0x1d5   : > { %v2287_v32 = vpop.eup %2286  ;;  %v780_v33 = vmul.f32 %v2285_v27, %v716_v7  ;;  %2312 = vpow2.f32 %v1136_v5  ;;  %v705_v34 = vmax.f32 %v3109_v17, %v3113_v22  ;;  %v3125_v35 = vmax.f32 %v3111_v18, %v3115_v23  ;;  %v717_v13 = vld [vmem:[#allocation5 + $0x48] sm:$0xff] }
 0x1d6   : > { %v2289_v36 = vpop.eup %2288  ;;  %2314 = vpow2.f32 %v1200_v6  ;;  %v1120_v38 = vsub.f32 %v1072_v11, %v1088_v29  ;;  %v1184_v39 = vsub.f32 %v3097_v53, %v1088_v29  ;;  %1264 = vst [vmem:[#allocation6 + $0x8] sm:$0xff] %v1088_v29  ;;  %v738_v40 = vsub.f32 %v690_v12, %v706_v30  ;;  %882 = vst [vmem:[#allocation4 + $0x38] sm:$0xff] %v706_v30 }
 0x1d7   : > { %1267 = vst [vmem:[#allocation6 + $0x30] sm:$0xff] %v1091_v31  ;;  %v2291_v41 = vpop.eup %2290  ;;  %v844_v42 = vadd.f32 %v2287_v32, %v780_v33  ;;  %v1165_v43 = vmul.f32 %v2289_v36, %v1101_v28  ;;  %2316 = vpow2.f32 %v757_v19  ;;  %v802_v45 = vsub.f32 %v3101_v2, %v706_v30  ;;  %881 = vst [vmem:[#allocation4 + $0x10] sm:$0xff] %v705_v34  ;;  %v1077_v2 = vld [vmem:[#allocation6 + $0x20] sm:$0xff] }
 0x1d8   : > { %1266 = vst [vmem:[#allocation6 + $0x18] sm:$0xff] %v3125_v35  ;;  %v2293_v46 = vpop.eup %2292  ;;  %2318 = vpow2.f32 %v821_v20  ;;  %v1140_v47 = vmul.f32 1.442695, %v1120_v38  ;;  %v1204_v48 = vmul.f32 1.442695, %v1184_v39  ;;  %v1123_v56 = vsub.f32 %v3107_v16, %v1091_v31  ;;  %v720_v33 = vld [vmem:[#allocation5] sm:$0xff] }
 0x1d9   : > { %v761_v49 = vmul.f32 1.442695, %v738_v40  ;;  %v2295_v50 = vpop.eup %2294  ;;  %860 = vst [vmem:[#allocation5 + $0x38] sm:$0xff] %v844_v42  ;;  %v1229_v51 = vadd.f32 %v2291_v41, %v1165_v43  ;;  %v779_v52 = vmul.f32 %v2293_v46, %v715_v37  ;;  %2320 = vpow2.f32 %v1142_v21  ;;  %v1029_v37 = vpop.f32.mrf.mxu1  ;;  %v1076_v38 = vld [vmem:[#allocation6 + $0x48] sm:$0xff]  ;;  %v1105_v46 = vld [vmem:[#allocation7 + $0x40] sm:$0xff] }
 0x1da   : > { %v825_v53 = vmul.f32 1.442695, %v802_v45  ;;  %v2297_v54 = vpop.eup %2296  ;;  %2322 = vpow2.f32 %v1206_v24  ;;  %v1187_v57 = vsub.f32 %v3103_v3, %v1091_v31  ;;  %v737_v58 = vsub.f32 %v3109_v17, %v705_v34  ;;  %v691_v31 = vld [vmem:[#allocation4 + $0x40] sm:$0xff] }
 0x1db   : > { %v2299_v59 = vpop.eup %2298  ;;  %1245 = vst [vmem:[#allocation7 + $0x70] sm:$0xff] %v1229_v51  ;;  %v843_v60 = vadd.f32 %v2295_v50, %v779_v52  ;;  %v1164_v61 = vmul.f32 %v2297_v54, %v1100_v44  ;;  %2324 = vpow2.f32 %v755_v25  ;;  %v801_v63 = vsub.f32 %v3113_v22, %v705_v34  ;;  %v3138_v22 = vpop.f32.mrf.mxu0  ;;  %v1102_v25 = vld [vmem:[#allocation7 + $0x8] sm:$0xff]  ;;  %v694_v44 = vld [vmem:[#allocation4 + $0x20] sm:$0xff] }
 0x1dc   : > { %v2301_v4 = vpop.eup %2300  ;;  %2326 = vpow2.f32 %v819_v26  ;;  %v1146_v5 = vmul.f32 1.442695, %v1123_v56  ;;  %v1210_v6 = vmul.f32 1.442695, %v1187_v57  ;;  %v759_v7 = vmul.f32 1.442695, %v737_v58 }
 0x1dd   : > { %v2303_v3 = vpop.eup %2302  ;;  %859 = vst [vmem:[#allocation5 + $0x18] sm:$0xff] %v843_v60  ;;  %v1228_v9 = vadd.f32 %v2299_v59, %v1164_v61  ;;  %v782_v10 = vmul.f32 %v2301_v4, %v718_v55  ;;  %2328 = vpow2.f32 %v1140_v47  ;;  %v823_v11 = vmul.f32 1.442695, %v801_v63  ;;  %v3140_v43 = vpop.f32.mrf.mxu0  ;;  %v719_v55 = vld [vmem:[#allocation5 + $0x28] sm:$0xff] }
 0x1de   : > { %v2305_v12 = vpop.eup %2304  ;;  %2330 = vpow2.f32 %v1204_v48  ;;  %v1122_v14 = vsub.f32 %v3111_v18, %v3125_v35  ;;  %v1186_v15 = vsub.f32 %v3115_v23, %v3125_v35  ;;  %v708_v16 = vmax.f32 %v692_v1, %v2101_v0  ;;  %v3145_v63 = vpop.f32.mrf.mxu1 }
 0x1df   : > { %v2307_v17 = vpop.eup %2306  ;;  %1244 = vst [vmem:[#allocation7 + $0x18] sm:$0xff] %v1228_v9  ;;  %v846_v19 = vadd.f32 %v2303_v3, %v782_v10  ;;  %v1167_v20 = vmul.f32 %v2305_v12, %v1103_v62  ;;  %2332 = vpow2.f32 %v761_v49  ;;  %v1093_v21 = vmax.f32 %v1077_v2, %v2157_v8 }
 0x1e0   : > { %v2309_v24 = vpop.eup %2308  ;;  %2334 = vpow2.f32 %v825_v53  ;;  %v1144_v26 = vmul.f32 1.442695, %v1122_v14  ;;  %v1208_v27 = vmul.f32 1.442695, %v1186_v15  ;;  %v740_v28 = vsub.f32 %v692_v1, %v708_v16  ;;  %884 = vst [vmem:[#allocation4 + $0x28] sm:$0xff] %v708_v16 }
 0x1e1   : > { %v2311_v18 = vpop.eup %2310  ;;  %862 = vst [vmem:[#allocation5 + $0x40] sm:$0xff] %v846_v19  ;;  %v1231_v29 = vadd.f32 %v2307_v17, %v1167_v20  ;;  %v781_v23 = vmul.f32 %v2309_v24, %v717_v13  ;;  %2336 = vpow2.f32 %v1146_v5  ;;  %v804_v30 = vsub.f32 %v2101_v0, %v708_v16  ;;  %1269 = vst [vmem:[#allocation6 + $0x20] sm:$0xff] %v1093_v21  ;;  %v3147_v0 = vpop.f32.mrf.mxu0  ;;  %v722_v13 = vld [vmem:[#allocation5 + $0x70] sm:$0xff] }
 0x1e2   : > { %v2313_v32 = vpop.eup %2312  ;;  %2338 = vpow2.f32 %v1210_v6  ;;  %v765_v34 = vmul.f32 1.442695, %v740_v28  ;;  %v1125_v35 = vsub.f32 %v1077_v2, %v1093_v21  ;;  %v1189_v36 = vsub.f32 %v2157_v8, %v1093_v21  ;;  %v1104_v2 = vld [vmem:[#allocation7 + $0x38] sm:$0xff] }
 0x1e3   : > { %v2315_v39 = vpop.eup %2314  ;;  %1247 = vst [vmem:[#allocation7] sm:$0xff] %v1231_v29  ;;  %v845_v40 = vadd.f32 %v2311_v18, %v781_v23  ;;  %v1166_v41 = vmul.f32 %v2313_v32, %v1102_v25  ;;  %2340 = vpow2.f32 %v759_v7  ;;  %v829_v42 = vmul.f32 1.442695, %v804_v30  ;;  %v1079_v7 = vld [vmem:[#allocation6 + $0x40] sm:$0xff]  ;;  %v3153_v24 = vpop.f32.mrf.mxu0 }
 0x1e4   : > { %v2317_v45 = vpop.eup %2316  ;;  %2342 = vpow2.f32 %v823_v11  ;;  %v1150_v47 = vmul.f32 1.442695, %v1125_v35  ;;  %v1214_v48 = vmul.f32 1.442695, %v1189_v36  ;;  %v707_v49 = vmax.f32 %v691_v31, %v3138_v22  ;;  %v693_v11 = vld [vmem:[#allocation4 + $0x70] sm:$0xff] }
 0x1e5   : > { %v2319_v50 = vpop.eup %2318  ;;  %861 = vst [vmem:[#allocation5 + $0x48] sm:$0xff] %v845_v40  ;;  %v1230_v51 = vadd.f32 %v2315_v39, %v1166_v41  ;;  %v784_v52 = vmul.f32 %v2317_v45, %v720_v33  ;;  %2344 = vpow2.f32 %v1144_v26  ;;  %v1092_v53 = vmax.f32 %v1076_v38, %v1029_v37  ;;  %v1107_v26 = vld [vmem:[#allocation7 + $0x58] sm:$0xff]  ;;  %v721_v33 = vld [vmem:[#allocation5 + $0x8] sm:$0xff] }
 0x1e6   : > { %v2321_v54 = vpop.eup %2320  ;;  %2346 = vpow2.f32 %v1208_v27  ;;  %v739_v56 = vsub.f32 %v691_v31, %v707_v49  ;;  %v803_v57 = vsub.f32 %v3138_v22, %v707_v49  ;;  %883 = vst [vmem:[#allocation4 + $0x40] sm:$0xff] %v707_v49  ;;  %v710_v58 = vmax.f32 %v694_v44, %v3140_v43  ;;  %v3151_v22 = vpop.f32.mrf.mxu1  ;;  %v1081_v45 = vld [vmem:[#allocation6 + $0x78] sm:$0xff] }
 0x1e7   : > { %v2323_v59 = vpop.eup %2322  ;;  %1246 = vst [vmem:[#allocation7 + $0x8] sm:$0xff] %v1230_v51  ;;  %v848_v60 = vadd.f32 %v2319_v50, %v784_v52  ;;  %v1169_v61 = vmul.f32 %v2321_v54, %v1105_v46  ;;  %2348 = vpow2.f32 %v765_v34  ;;  %v1124_v62 = vsub.f32 %v1076_v38, %v1092_v53  ;;  %1268 = vst [vmem:[#allocation6 + $0x48] sm:$0xff] %v1092_v53  ;;  %v1106_v34 = vld [vmem:[#allocation7 + $0x20] sm:$0xff]  ;;  %v1078_v38 = vld [vmem:[#allocation6 + $0x10] sm:$0xff]  ;;  %v3158_v46 = vpop.f32.mrf.mxu0 }
 0x1e8   : > { %v2325_v1 = vpop.eup %2324  ;;  %2350 = vpow2.f32 %v829_v42  ;;  %v763_v4 = vmul.f32 1.442695, %v739_v56  ;;  %v827_v5 = vmul.f32 1.442695, %v803_v57  ;;  %v1188_v6 = vsub.f32 %v1029_v37, %v1092_v53  ;;  %886 = vst [vmem:[#allocation4 + $0x20] sm:$0xff] %v710_v58  ;;  %v724_v57 = vld [vmem:[#allocation5 + $0x60] sm:$0xff] }
 0x1e9   : > { %v2327_v8 = vpop.eup %2326  ;;  %864 = vst [vmem:[#allocation5] sm:$0xff] %v848_v60  ;;  %v1233_v3 = vadd.f32 %v2323_v59, %v1169_v61  ;;  %v783_v9 = vmul.f32 %v2325_v1, %v719_v55  ;;  %2352 = vpow2.f32 %v1150_v47  ;;  %v1148_v10 = vmul.f32 1.442695, %v1124_v62  ;;  %v3160_v47 = vld [vmem:[#allocation4 + $0x58] sm:$0xff] }
 0x1ea   : > { %v2329_v12 = vpop.eup %2328  ;;  %2354 = vpow2.f32 %v1214_v48  ;;  %v1212_v14 = vmul.f32 1.442695, %v1188_v6  ;;  %v742_v15 = vsub.f32 %v694_v44, %v710_v58  ;;  %v806_v16 = vsub.f32 %v3140_v43, %v710_v58  ;;  %v696_v43 = vld [vmem:[#allocation4 + $0x30] sm:$0xff]  ;;  %v2163_v44 = vpop.f32.mrf.mxu1 }
 0x1eb   : > { %v2331_v17 = vpop.eup %2330  ;;  %1249 = vst [vmem:[#allocation7 + $0x40] sm:$0xff] %v1233_v3  ;;  %v847_v19 = vadd.f32 %v2327_v8, %v783_v9  ;;  %v1168_v20 = vmul.f32 %v2329_v12, %v1104_v2  ;;  %2356 = vpow2.f32 %v763_v4  ;;  %v1095_v21 = vmax.f32 %v1079_v7, %v3145_v63  ;;  %v1109_v2 = vld [vmem:[#allocation7 + $0x10] sm:$0xff]  ;;  %v723_v9 = vld [vmem:[#allocation5 + $0x68] sm:$0xff] }
 0x1ec   : > { %v2333_v25 = vpop.eup %2332  ;;  %2358 = vpow2.f32 %v827_v5  ;;  %v769_v27 = vmul.f32 1.442695, %v742_v15  ;;  %v833_v28 = vmul.f32 1.442695, %v806_v16  ;;  %v709_v18 = vmax.f32 %v693_v11, %v3147_v0  ;;  %v1049_v12 = vpop.f32.mrf.mxu1 }
 0x1ed   : > { %v2335_v29 = vpop.eup %2334  ;;  %863 = vst [vmem:[#allocation5 + $0x28] sm:$0xff] %v847_v19  ;;  %v1232_v23 = vadd.f32 %v2331_v17, %v1168_v20  ;;  %v786_v30 = vmul.f32 %v2333_v25, %v722_v13  ;;  %2360 = vpow2.f32 %v1148_v10  ;;  %v1127_v31 = vsub.f32 %v1079_v7, %v1095_v21  ;;  %1271 = vst [vmem:[#allocation6 + $0x40] sm:$0xff] %v1095_v21  ;;  %v1080_v13 = vld [vmem:[#allocation6] sm:$0xff]  ;;  %v2110_v25 = vpop.f32.mrf.mxu0 }
 0x1ee   : > { %v2337_v32 = vpop.eup %2336  ;;  %2362 = vpow2.f32 %v1212_v14  ;;  %v1191_v35 = vsub.f32 %v3145_v63, %v1095_v21  ;;  %v741_v36 = vsub.f32 %v693_v11, %v709_v18  ;;  %v805_v37 = vsub.f32 %v3147_v0, %v709_v18  ;;  %885 = vst [vmem:[#allocation4 + $0x70] sm:$0xff] %v709_v18 }
 0x1ef   : > { %v2339_v39 = vpop.eup %2338  ;;  %1248 = vst [vmem:[#allocation7 + $0x38] sm:$0xff] %v1232_v23  ;;  %v850_v40 = vadd.f32 %v2335_v29, %v786_v30  ;;  %v1171_v41 = vmul.f32 %v2337_v32, %v1107_v26  ;;  %2364 = vpow2.f32 %v769_v27  ;;  %v1154_v42 = vmul.f32 1.442695, %v1127_v31  ;;  %v698_v26 = vld [vmem:[#allocation4 + $0x78] sm:$0xff] }
 0x1f0   : > { %v2341_v48 = vpop.eup %2340  ;;  %2366 = vpow2.f32 %v833_v28  ;;  %v1218_v49 = vmul.f32 1.442695, %v1191_v35  ;;  %v767_v50 = vmul.f32 1.442695, %v741_v36  ;;  %v831_v51 = vmul.f32 1.442695, %v805_v37 }
 0x1f1   : > { %v2343_v52 = vpop.eup %2342  ;;  %866 = vst [vmem:[#allocation5 + $0x70] sm:$0xff] %v850_v40  ;;  %v1235_v53 = vadd.f32 %v2339_v39, %v1171_v41  ;;  %v785_v54 = vmul.f32 %v2341_v48, %v721_v33  ;;  %2368 = vpow2.f32 %v1154_v42  ;;  %v1094_v55 = vmax.f32 %v1078_v38, %v3151_v22  ;;  %v1108_v28 = vld [vmem:[#allocation7 + $0x78] sm:$0xff]  ;;  %v726_v36 = vld [vmem:[#allocation5 + $0x30] sm:$0xff] }
 0x1f2   : > { %v2345_v56 = vpop.eup %2344  ;;  %2370 = vpow2.f32 %v1218_v49  ;;  %v712_v58 = vmax.f32 %v696_v43, %v3153_v24  ;;  %v1097_v59 = vmax.f32 %v1081_v45, %v2163_v44  ;;  %v711_v60 = vmax.f32 %v3160_v47, %v3158_v46  ;;  %v1083_v49 = vld [vmem:[#allocation6 + $0x28] sm:$0xff] }
 0x1f3   : > { %v2347_v61 = vpop.eup %2346  ;;  %1251 = vst [vmem:[#allocation7 + $0x58] sm:$0xff] %v1235_v53  ;;  %v849_v62 = vadd.f32 %v2343_v52, %v785_v54  ;;  %v1170_v63 = vmul.f32 %v2345_v56, %v1106_v34  ;;  %2372 = vpow2.f32 %v767_v50  ;;  %v1126_v0 = vsub.f32 %v1078_v38, %v1094_v55  ;;  %1270 = vst [vmem:[#allocation6 + $0x10] sm:$0xff] %v1094_v55  ;;  %v3170_v34 = vpop.f32.mrf.mxu1  ;;  %v725_v53 = vld [vmem:[#allocation5 + $0x78] sm:$0xff]  ;;  %v697_v56 = vld [vmem:[#allocation4 + $0x50] sm:$0xff] }
 0x1f4   : > { %v2349_v1 = vpop.eup %2348  ;;  %2374 = vpow2.f32 %v831_v51  ;;  %v1190_v4 = vsub.f32 %v3151_v22, %v1094_v55  ;;  %v744_v5 = vsub.f32 %v696_v43, %v712_v58  ;;  %v808_v6 = vsub.f32 %v3153_v24, %v712_v58  ;;  %888 = vst [vmem:[#allocation4 + $0x30] sm:$0xff] %v712_v58  ;;  %1273 = vst [vmem:[#allocation6 + $0x78] sm:$0xff] %v1097_v59  ;;  %v674_v55 = vpop.f32.mrf.mxu0  ;;  %v1082_v58 = vld [vmem:[#allocation6 + $0x38] sm:$0xff] }
 0x1f5   : > { %887 = vst [vmem:[#allocation4 + $0x58] sm:$0xff] %v711_v60  ;;  %v2351_v7 = vpop.eup %2350  ;;  %865 = vst [vmem:[#allocation5 + $0x8] sm:$0xff] %v849_v62  ;;  %v1234_v8 = vadd.f32 %v2347_v61, %v1170_v63  ;;  %v788_v3 = vmul.f32 %v2349_v1, %v724_v57  ;;  %v1152_v10 = vmul.f32 1.442695, %v1126_v0  ;;  %v1129_v11 = vsub.f32 %v1081_v45, %v1097_v59  ;;  %v1111_v45 = vld [vmem:[#allocation7 + $0x48] sm:$0xff]  ;;  %v1059_v57 = vpop.f32.mrf.mxu1 }
 0x1f6   : > { %v2353_v14 = vpop.eup %2352  ;;  %v1216_v15 = vmul.f32 1.442695, %v1190_v4  ;;  %v773_v16 = vmul.f32 1.442695, %v744_v5  ;;  %v837_v17 = vmul.f32 1.442695, %v808_v6  ;;  %v1193_v19 = vsub.f32 %v2163_v44, %v1097_v59 }
 0x1f7   : > { %v2355_v20 = vpop.eup %2354  ;;  %1250 = vst [vmem:[#allocation7 + $0x20] sm:$0xff] %v1234_v8  ;;  %v852_v21 = vadd.f32 %v2351_v7, %v788_v3  ;;  %v1173_v22 = vmul.f32 %v2353_v14, %v1109_v2  ;;  %2376 = vpow2.f32 %v1152_v10  ;;  %v1158_v24 = vmul.f32 1.442695, %v1129_v11  ;;  %v1110_v10 = vld [vmem:[#allocation7 + $0x60] sm:$0xff] }
 0x1f8   : > { %v2357_v27 = vpop.eup %2356  ;;  %2378 = vpow2.f32 %v1216_v15  ;;  %v1222_v18 = vmul.f32 1.442695, %v1193_v19  ;;  %v743_v29 = vsub.f32 %v3160_v47, %v711_v60  ;;  %v807_v23 = vsub.f32 %v3158_v46, %v711_v60  ;;  %v728_v15 = vld [vmem:[#allocation5 + $0x20] sm:$0xff] }
 0x1f9   : > { %v2359_v30 = vpop.eup %2358  ;;  %868 = vst [vmem:[#allocation5 + $0x60] sm:$0xff] %v852_v21  ;;  %v1237_v31 = vadd.f32 %v2355_v20, %v1173_v22  ;;  %v787_v32 = vmul.f32 %v2357_v27, %v723_v9  ;;  %2380 = vpow2.f32 %v773_v16  ;;  %v1096_v33 = vmax.f32 %v1080_v13, %v1049_v12 }
 0x1fa   : > { %v2361_v35 = vpop.eup %2360  ;;  %2382 = vpow2.f32 %v837_v17  ;;  %v771_v37 = vmul.f32 1.442695, %v743_v29  ;;  %v835_v38 = vmul.f32 1.442695, %v807_v23  ;;  %v714_v39 = vmax.f32 %v698_v26, %v2110_v25 }
 0x1fb   : > { %v2363_v40 = vpop.eup %2362  ;;  %1253 = vst [vmem:[#allocation7 + $0x10] sm:$0xff] %v1237_v31  ;;  %v851_v41 = vadd.f32 %v2359_v30, %v787_v32  ;;  %v1172_v42 = vmul.f32 %v2361_v35, %v1108_v28  ;;  %2384 = vpow2.f32 %v1158_v24  ;;  %v1128_v43 = vsub.f32 %v1080_v13, %v1096_v33  ;;  %1272 = vst [vmem:[#allocation6] sm:$0xff] %v1096_v33 }
 0x1fc   : > { %v2365_v44 = vpop.eup %2364  ;;  %2386 = vpow2.f32 %v1222_v18  ;;  %v1192_v46 = vsub.f32 %v1049_v12, %v1096_v33  ;;  %v746_v47 = vsub.f32 %v698_v26, %v714_v39  ;;  %v810_v48 = vsub.f32 %v2110_v25, %v714_v39  ;;  %890 = vst [vmem:[#allocation4 + $0x78] sm:$0xff] %v714_v39  ;;  %v1113_v18 = vld [vmem:[#allocation7 + $0x28] sm:$0xff]  ;;  %v727_v33 = vld [vmem:[#allocation5 + $0x50] sm:$0xff] }
 0x1fd   : > { %v2367_v50 = vpop.eup %2366  ;;  %867 = vst [vmem:[#allocation5 + $0x68] sm:$0xff] %v851_v41  ;;  %v1236_v51 = vadd.f32 %v2363_v40, %v1172_v42  ;;  %v790_v52 = vmul.f32 %v2365_v44, %v726_v36  ;;  %2388 = vpow2.f32 %v771_v37  ;;  %v1156_v54 = vmul.f32 1.442695, %v1128_v43  ;;  %v730_v43 = vld [vmem:[#allocation5 + $0x10] sm:$0xff] }
 0x1fe   : > { %v2369_v59 = vpop.eup %2368  ;;  %2390 = vpow2.f32 %v835_v38  ;;  %v1220_v60 = vmul.f32 1.442695, %v1192_v46  ;;  %v777_v61 = vmul.f32 1.442695, %v746_v47  ;;  %v841_v62 = vmul.f32 1.442695, %v810_v48 }
 0x1ff   : > { %v2371_v63 = vpop.eup %2370  ;;  %1252 = vst [vmem:[#allocation7 + $0x78] sm:$0xff] %v1236_v51  ;;  %v854_v0 = vadd.f32 %v2367_v50, %v790_v52  ;;  %v1175_v1 = vmul.f32 %v2369_v59, %v1111_v45  ;;  %2392 = vpow2.f32 %v1156_v54  ;;  %v1099_v2 = vmax.f32 %v1083_v49, %v3170_v34  ;;  %v1112_v38 = vld [vmem:[#allocation7 + $0x68] sm:$0xff]  ;;  %v1115_v51 = vld [vmem:[#allocation7 + $0x30] sm:$0xff]  ;;  %v729_v54 = vld [vmem:[#allocation5 + $0x58] sm:$0xff] }
 0x200   : > { %v2373_v4 = vpop.eup %2372  ;;  %2394 = vpow2.f32 %v1220_v60  ;;  %v713_v5 = vmax.f32 %v697_v56, %v674_v55  ;;  %v1098_v6 = vmax.f32 %v1082_v58, %v1059_v57 }
 0x201   : > { %v2375_v7 = vpop.eup %2374  ;;  %870 = vst [vmem:[#allocation5 + $0x30] sm:$0xff] %v854_v0  ;;  %v1239_v8 = vadd.f32 %v2371_v63, %v1175_v1  ;;  %v789_v3 = vmul.f32 %v2373_v4, %v725_v53  ;;  %2396 = vpow2.f32 %v777_v61  ;;  %v1131_v9 = vsub.f32 %v1083_v49, %v1099_v2  ;;  %1275 = vst [vmem:[#allocation6 + $0x28] sm:$0xff] %v1099_v2 }
 0x202   : > { %2398 = vpow2.f32 %v841_v62  ;;  %v1195_v11 = vsub.f32 %v3170_v34, %v1099_v2  ;;  %v745_v12 = vsub.f32 %v697_v56, %v713_v5  ;;  %v809_v13 = vsub.f32 %v674_v55, %v713_v5  ;;  %889 = vst [vmem:[#allocation4 + $0x50] sm:$0xff] %v713_v5  ;;  %1274 = vst [vmem:[#allocation6 + $0x38] sm:$0xff] %v1098_v6 }
 0x203   : > { %1255 = vst [vmem:[#allocation7 + $0x48] sm:$0xff] %v1239_v8  ;;  %v853_v14 = vadd.f32 %v2375_v7, %v789_v3  ;;  %v1162_v16 = vmul.f32 1.442695, %v1131_v9  ;;  %v1130_v17 = vsub.f32 %v1082_v58, %v1098_v6  ;;  %v1194_v19 = vsub.f32 %v1059_v57, %v1098_v6  ;;  %v1114_v58 = vld [vmem:[#allocation7 + $0x50] sm:$0xff] }
 0x204   : > { %v2377_v20 = vpop.eup %2376  ;;  %v1226_v21 = vmul.f32 1.442695, %v1195_v11  ;;  %v775_v22 = vmul.f32 1.442695, %v745_v12  ;;  %v839_v24 = vmul.f32 1.442695, %v809_v13 }
 0x205   : > { %v2379_v25 = vpop.eup %2378  ;;  %869 = vst [vmem:[#allocation5 + $0x78] sm:$0xff] %v853_v14  ;;  %v1174_v26 = vmul.f32 %v2377_v20, %v1110_v10  ;;  %2400 = vpow2.f32 %v1162_v16  ;;  %v1160_v27 = vmul.f32 1.442695, %v1130_v17  ;;  %v1224_v31 = vmul.f32 1.442695, %v1194_v19 }
 0x206   : > { %v2381_v28 = vpop.eup %2380  ;;  %2402 = vpow2.f32 %v1226_v21 }
 0x207   : > { %v2383_v29 = vpop.eup %2382  ;;  %v1238_v23 = vadd.f32 %v2379_v25, %v1174_v26  ;;  %v792_v30 = vmul.f32 %v2381_v28, %v728_v15  ;;  %2404 = vpow2.f32 %v775_v22 }
 0x208   : > { %v2385_v32 = vpop.eup %2384  ;;  %2406 = vpow2.f32 %v839_v24 }
 0x209   : > { %v2387_v34 = vpop.eup %2386  ;;  %1254 = vst [vmem:[#allocation7 + $0x60] sm:$0xff] %v1238_v23  ;;  %v856_v35 = vadd.f32 %v2383_v29, %v792_v30  ;;  %v1177_v36 = vmul.f32 %v2385_v32, %v1113_v18  ;;  %2408 = vpow2.f32 %v1160_v27 }
 0x20a   : > { %v2389_v37 = vpop.eup %2388  ;;  %2410 = vpow2.f32 %v1224_v31 }
 0x20b   : > { %v2391_v39 = vpop.eup %2390  ;;  %872 = vst [vmem:[#allocation5 + $0x20] sm:$0xff] %v856_v35  ;;  %v1241_v40 = vadd.f32 %v2387_v34, %v1177_v36  ;;  %v791_v41 = vmul.f32 %v2389_v37, %v727_v33 }
 0x20c   : > { %v2393_v42 = vpop.eup %2392 }
 0x20d   : > { %v2395_v44 = vpop.eup %2394  ;;  %1257 = vst [vmem:[#allocation7 + $0x28] sm:$0xff] %v1241_v40  ;;  %v855_v45 = vadd.f32 %v2391_v39, %v791_v41  ;;  %v1176_v46 = vmul.f32 %v2393_v42, %v1112_v38 }
 0x20e   : > { %v2397_v47 = vpop.eup %2396 }
 0x20f   : > { %v2399_v48 = vpop.eup %2398  ;;  %871 = vst [vmem:[#allocation5 + $0x50] sm:$0xff] %v855_v45  ;;  %v1240_v49 = vadd.f32 %v2395_v44, %v1176_v46  ;;  %v794_v50 = vmul.f32 %v2397_v47, %v730_v43 }
 0x211   : > { %1256 = vst [vmem:[#allocation7 + $0x68] sm:$0xff] %v1240_v49  ;;  %v858_v52 = vadd.f32 %v2399_v48, %v794_v50 }
 0x212   : > { %v2401_v53 = vpop.eup %2400 }
 0x213   : > { %v2403_v55 = vpop.eup %2402  ;;  %874 = vst [vmem:[#allocation5 + $0x10] sm:$0xff] %v858_v52  ;;  %v1179_v56 = vmul.f32 %v2401_v53, %v1115_v51 }
 0x214   : > { %v2405_v57 = vpop.eup %2404 }
 0x215   : > { %v2407_v59 = vpop.eup %2406  ;;  %v1243_v60 = vadd.f32 %v2403_v55, %v1179_v56  ;;  %v793_v61 = vmul.f32 %v2405_v57, %v729_v54 }
 0x216   : > { %v2409_v62 = vpop.eup %2408 }
 0x217   : > { %1259 = vst [vmem:[#allocation7 + $0x30] sm:$0xff] %v1243_v60  ;;  %v857_v63 = vadd.f32 %v2407_v59, %v793_v61  ;;  %v1178_v0 = vmul.f32 %v2409_v62, %v1114_v58  ;;  %v2411_v1 = vpop.eup %2410  ;;  %1279 = sbr.rel (%p1984_p3) target bundleno = 941 (0x3ad), region = 64 }
 0x219   : > { %873 = vst [vmem:[#allocation5 + $0x58] sm:$0xff] %v857_v63  ;;  %v1242_v2 = vadd.f32 %v2411_v1, %v1178_v0 }
 0x21b   : > { %1258 = vst [vmem:[#allocation7 + $0x50] sm:$0xff] %v1242_v2 }
 0x21c   : > { %v3175_v4 = vld [vmem:[#allocation6 + $0x68] sm:$0xff]  ;;  %v3181_v6 = vld [vmem:[#allocation6 + $0x50] sm:$0xff]  ;;  %v3183_v7 = vld [vmem:[#allocation4] sm:$0xff] }
 0x21d   : > { %v3177_v5 = vld [vmem:[#allocation4 + $0x8] sm:$0xff]  ;;  %1584 = vmax.xlane.f32.xlu1 %v3175_v4  ;;  %v3187_v8 = vld [vmem:[#allocation6 + $0x70] sm:$0xff]  ;;  %v3193_v9 = vld [vmem:[#allocation6 + $0x60] sm:$0xff] }
 0x21e   : > { %1376 = vmax.xlane.f32.xlu0 %v3177_v5  ;;  %v3189_v3 = vld [vmem:[#allocation4 + $0x48] sm:$0xff]  ;;  %v3195_v10 = vld [vmem:[#allocation4 + $0x60] sm:$0xff]  ;;  %v3205_v13 = vld [vmem:[#allocation6 + $0x58] sm:$0xff] }
 0x21f   : > { %v3199_v11 = vld [vmem:[#allocation6 + $0x8] sm:$0xff]  ;;  %v3207_v14 = vld [vmem:[#allocation4 + $0x18] sm:$0xff]  ;;  %v3213_v16 = vld [vmem:[#allocation4 + $0x10] sm:$0xff] }
 0x220   : > { %v3201_v12 = vld [vmem:[#allocation4 + $0x68] sm:$0xff]  ;;  %v3211_v15 = vld [vmem:[#allocation6 + $0x18] sm:$0xff]  ;;  %v3217_v17 = vld [vmem:[#allocation6 + $0x30] sm:$0xff] }
 0x221   : > { %1586 = vmax.xlane.f32.xlu1 %v3181_v6  ;;  %v3219_v19 = vld [vmem:[#allocation4 + $0x38] sm:$0xff]  ;;  %v3223_v20 = vld [vmem:[#allocation6 + $0x48] sm:$0xff]  ;;  %v3225_v21 = vld [vmem:[#allocation4 + $0x40] sm:$0xff] }
 0x222   : > { %1378 = vmax.xlane.f32.xlu0 %v3183_v7  ;;  %v3229_v22 = vld [vmem:[#allocation6 + $0x20] sm:$0xff]  ;;  %v3231_v24 = vld [vmem:[#allocation4 + $0x28] sm:$0xff]  ;;  %v3235_v25 = vld [vmem:[#allocation6 + $0x10] sm:$0xff] }
 0x223   : > { %v3237_v26 = vld [vmem:[#allocation4 + $0x70] sm:$0xff]  ;;  %v3241_v27 = vld [vmem:[#allocation6 + $0x40] sm:$0xff]  ;;  %v3249_v29 = vld [vmem:[#allocation4 + $0x58] sm:$0xff] }
 0x224   : > { %v3243_v28 = vld [vmem:[#allocation4 + $0x20] sm:$0xff]  ;;  %v3253_v23 = vld [vmem:[#allocation6 + $0x78] sm:$0xff]  ;;  %v3255_v30 = vld [vmem:[#allocation4 + $0x30] sm:$0xff] }
 0x225   : > { %1588 = vmax.xlane.f32.xlu1 %v3187_v8  ;;  %v3247_v18 = vld [vmem:[#allocation6] sm:$0xff]  ;;  %v3259_v31 = vld [vmem:[#allocation6 + $0x38] sm:$0xff]  ;;  %v3261_v32 = vld [vmem:[#allocation4 + $0x50] sm:$0xff] }
 0x226   : > { %1380 = vmax.xlane.f32.xlu0 %v3189_v3  ;;  %v3265_v33 = vld [vmem:[#allocation6 + $0x28] sm:$0xff]  ;;  %v3267_v34 = vld [vmem:[#allocation4 + $0x78] sm:$0xff]  ;;  %v1280_v35 = vld [vmem:[#allocation2 + $0x30] sm:$0xff] }
 0x227   : > { %v1296_v36 = vld [vmem:[#allocation11] sm:$0xff]  ;;  %v1297_v38 = vld [vmem:[#allocation11 + $0x8] sm:$0xff]  ;;  %v1282_v40 = vld [vmem:[#allocation2 + $0x58] sm:$0xff] }
 0x228   : > { %v1281_v37 = vld [vmem:[#allocation2] sm:$0xff]  ;;  %v1312_v39 = vmul.f32 %v1296_v36, %v1280_v35  ;;  %v1298_v42 = vld [vmem:[#allocation11 + $0x10] sm:$0xff]  ;;  %v1283_v43 = vld [vmem:[#allocation2 + $0x18] sm:$0xff] }
 0x229   : > { %1590 = vmax.xlane.f32.xlu1 %v3193_v9  ;;  %v1313_v41 = vmul.f32 %v1297_v38, %v1281_v37  ;;  %v1299_v44 = vld [vmem:[#allocation11 + $0x18] sm:$0xff]  ;;  %v1314_v45 = vmul.f32 %v1298_v42, %v1282_v40  ;;  %v1284_v46 = vld [vmem:[#allocation2 + $0x50] sm:$0xff]  ;;  %v1300_v48 = vld [vmem:[#allocation11 + $0x20] sm:$0xff] }
 0x22a   : > { %1382 = vmax.xlane.f32.xlu0 %v3195_v10  ;;  %v1315_v47 = vmul.f32 %v1299_v44, %v1283_v43  ;;  %v1285_v49 = vld [vmem:[#allocation2 + $0x68] sm:$0xff]  ;;  %v1316_v51 = vmul.f32 %v1300_v48, %v1284_v46  ;;  %v1302_v54 = vld [vmem:[#allocation11 + $0x30] sm:$0xff]  ;;  %v1408_v46 = vld [vmem:[#allocation5 + $0x18] sm:$0xff] }
 0x22b   : > { %v1301_v50 = vld [vmem:[#allocation11 + $0x28] sm:$0xff] }
 0x22c   : > { %v1317_v52 = vmul.f32 %v1301_v50, %v1285_v49  ;;  %v1286_v53 = vld [vmem:[#allocation2 + $0x8] sm:$0xff]  ;;  %v1616_v49 = vld [vmem:[#allocation7 + $0x18] sm:$0xff] }
 0x22d   : > { %1592 = vmax.xlane.f32.xlu1 %v3199_v11  ;;  %v1318_v55 = vmul.f32 %v1302_v54, %v1286_v53 }
 0x22e   : > { %1384 = vmax.xlane.f32.xlu0 %v3201_v12 }
 0x231   : > { %1594 = vmax.xlane.f32.xlu1 %v3205_v13 }
 0x232   : > { %1386 = vmax.xlane.f32.xlu0 %v3207_v14 }
 0x235   : > { %1596 = vmax.xlane.f32.xlu1 %v3211_v15 }
 0x236   : > { %1388 = vmax.xlane.f32.xlu0 %v3213_v16 }
 0x239   : > { %1598 = vmax.xlane.f32.xlu1 %v3217_v17 }
 0x23a   : > { %1390 = vmax.xlane.f32.xlu0 %v3219_v19 }
 0x23d   : > { %1600 = vmax.xlane.f32.xlu1 %v3223_v20 }
 0x23e   : > { %1392 = vmax.xlane.f32.xlu0 %v3225_v21 }
 0x241   : > { %1602 = vmax.xlane.f32.xlu1 %v3229_v22 }
 0x242   : > { %1394 = vmax.xlane.f32.xlu0 %v3231_v24 }
 0x245   : > { %1604 = vmax.xlane.f32.xlu1 %v3235_v25 }
 0x246   : > { %1396 = vmax.xlane.f32.xlu0 %v3237_v26 }
 0x249   : > { %1606 = vmax.xlane.f32.xlu1 %v3241_v27 }
 0x24a   : > { %1398 = vmax.xlane.f32.xlu0 %v3243_v28 }
 0x24d   : > { %1608 = vmax.xlane.f32.xlu1 %v3247_v18 }
 0x24e   : > { %1400 = vmax.xlane.f32.xlu0 %v3249_v29 }
 0x251   : > { %1610 = vmax.xlane.f32.xlu1 %v3253_v23 }
 0x252   : > { %1402 = vmax.xlane.f32.xlu0 %v3255_v30 }
 0x255   : > { %1612 = vmax.xlane.f32.xlu1 %v3259_v31 }
 0x256   : > { %1404 = vmax.xlane.f32.xlu0 %v3261_v32 }
 0x259   : > { %1614 = vmax.xlane.f32.xlu1 %v3265_v33 }
 0x25a   : > { %1406 = vmax.xlane.f32.xlu0 %v3267_v34 }
 0x25d   : > { %1330 = vadd.xlane.f32.xlu1 %v1313_v41 }
 0x25e   : > { %1328 = vadd.xlane.f32.xlu0 %v1312_v39 }
 0x261   : > { %1334 = vadd.xlane.f32.xlu1 %v1315_v47 }
 0x262   : > { %1332 = vadd.xlane.f32.xlu0 %v1314_v45 }
 0x265   : > { %1338 = vadd.xlane.f32.xlu1 %v1317_v52 }
 0x266   : > { %1336 = vadd.xlane.f32.xlu0 %v1316_v51 }
 0x26a   : > { %1340 = vadd.xlane.f32.xlu0 %v1318_v55 }
 0x2a6   : > { %v3271_v56 = vpop.xlane.xlu1 %1584 }
 0x2a7   : > { %v3273_v57 = vpop.xlane.xlu0 %1376  ;;  %v1632_v58 = vsub.f32 %v3175_v4, %v3271_v56 }
 0x2a8   : > { %v1424_v59 = vsub.f32 %v3177_v5, %v3273_v57 }
 0x2a9   : > { %v1648_v60 = vmul.f32 1.442695, %v1632_v58 }
 0x2aa   : > { %v1440_v61 = vmul.f32 1.442695, %v1424_v59  ;;  %v3279_v62 = vpop.xlane.xlu1 %1586 }
 0x2ab   : > { %v3281_v63 = vpop.xlane.xlu0 %1378  ;;  %2412 = vpow2.f32 %v1648_v60  ;;  %v1633_v0 = vsub.f32 %v3181_v6, %v3279_v62 }
 0x2ac   : > { %v1425_v1 = vsub.f32 %v3183_v7, %v3281_v63  ;;  %2414 = vpow2.f32 %v1440_v61  ;;  %v1617_v61 = vld [vmem:[#allocation7 + $0x70] sm:$0xff] }
 0x2ad   : > { %v1650_v2 = vmul.f32 1.442695, %v1633_v0 }
 0x2ae   : > { %v1442_v35 = vmul.f32 1.442695, %v1425_v1  ;;  %v3287_v4 = vpop.xlane.xlu1 %1588 }
 0x2af   : > { %v3289_v36 = vpop.xlane.xlu0 %1380  ;;  %2416 = vpow2.f32 %v1650_v2  ;;  %v1634_v5 = vsub.f32 %v3187_v8, %v3287_v4 }
 0x2b0   : > { %v1426_v37 = vsub.f32 %v3189_v3, %v3289_v36  ;;  %2418 = vpow2.f32 %v1442_v35  ;;  %v1410_v35 = vld [vmem:[#allocation5 + $0x48] sm:$0xff] }
 0x2b1   : > { %v1652_v38 = vmul.f32 1.442695, %v1634_v5 }
 0x2b2   : > { %v1444_v6 = vmul.f32 1.442695, %v1426_v37  ;;  %v3295_v39 = vpop.xlane.xlu1 %1590 }
 0x2b3   : > { %v3297_v7 = vpop.xlane.xlu0 %1382  ;;  %2420 = vpow2.f32 %v1652_v38  ;;  %v1635_v40 = vsub.f32 %v3193_v9, %v3295_v39 }
 0x2b4   : > { %v1427_v41 = vsub.f32 %v3195_v10, %v3297_v7  ;;  %2422 = vpow2.f32 %v1444_v6 }
 0x2b5   : > { %v1654_v42 = vmul.f32 1.442695, %v1635_v40 }
 0x2b6   : > { %v1446_v8 = vmul.f32 1.442695, %v1427_v41  ;;  %v3303_v43 = vpop.xlane.xlu1 %1592  ;;  %v1618_v41 = vld [vmem:[#allocation7 + $0x8] sm:$0xff] }
 0x2b7   : > { %v3305_v3 = vpop.xlane.xlu0 %1384  ;;  %2424 = vpow2.f32 %v1654_v42  ;;  %v1636_v44 = vsub.f32 %v3199_v11, %v3303_v43 }
 0x2b8   : > { %v1428_v45 = vsub.f32 %v3201_v12, %v3305_v3  ;;  %v2413_v47 = vpop.eup %2412  ;;  %2426 = vpow2.f32 %v1446_v8  ;;  %v1409_v12 = vld [vmem:[#allocation5 + $0x38] sm:$0xff] }
 0x2b9   : > { %v2415_v9 = vpop.eup %2414  ;;  %v1656_v48 = vmul.f32 1.442695, %v1636_v44  ;;  %v1680_v55 = vmul.f32 %v2413_v47, %v1616_v49  ;;  %v1619_v49 = vld [vmem:[#allocation7] sm:$0xff] }
 0x2ba   : > { %v1448_v10 = vmul.f32 1.442695, %v1428_v45  ;;  %v3311_v50 = vpop.xlane.xlu1 %1594  ;;  %v1472_v52 = vmul.f32 %v2415_v9, %v1408_v46  ;;  %v1411_v45 = vld [vmem:[#allocation5 + $0x40] sm:$0xff] }
 0x2bb   : > { %v3313_v51 = vpop.xlane.xlu0 %1386  ;;  %2428 = vpow2.f32 %v1656_v48  ;;  %v1637_v53 = vsub.f32 %v3205_v13, %v3311_v50 }
 0x2bc   : > { %v1429_v11 = vsub.f32 %v3207_v14, %v3313_v51  ;;  %v2417_v54 = vpop.eup %2416  ;;  %2430 = vpow2.f32 %v1448_v10  ;;  %1488 = vadd.xlane.f32.xlu0 %v1472_v52 }
 0x2bd   : > { %v2419_v58 = vpop.eup %2418  ;;  %v1658_v59 = vmul.f32 1.442695, %v1637_v53  ;;  %v1681_v37 = vmul.f32 %v2417_v54, %v1617_v61  ;;  %v1620_v61 = vld [vmem:[#allocation7 + $0x38] sm:$0xff] }
 0x2be   : > { %v1450_v60 = vmul.f32 1.442695, %v1429_v11  ;;  %v3319_v0 = vpop.xlane.xlu1 %1596  ;;  %v1473_v2 = vmul.f32 %v2419_v58, %v1409_v12  ;;  %v1412_v12 = vld [vmem:[#allocation5 + $0x28] sm:$0xff] }
 0x2bf   : > { %v3321_v1 = vpop.xlane.xlu0 %1388  ;;  %2432 = vpow2.f32 %v1658_v59  ;;  %v1638_v13 = vsub.f32 %v3211_v15, %v3319_v0 }
 0x2c0   : > { %v1430_v14 = vsub.f32 %v3213_v16, %v3321_v1  ;;  %v2421_v5 = vpop.eup %2420  ;;  %2434 = vpow2.f32 %v1450_v60  ;;  %1490 = vadd.xlane.f32.xlu1 %v1473_v2  ;;  %1696 = vadd.xlane.f32.xlu0 %v1680_v55 }
 0x2c1   : > { %v2423_v38 = vpop.eup %2422  ;;  %v1660_v6 = vmul.f32 1.442695, %v1638_v13  ;;  %v1682_v47 = vmul.f32 %v2421_v5, %v1618_v41  ;;  %v1621_v41 = vld [vmem:[#allocation7 + $0x40] sm:$0xff] }
 0x2c2   : > { %v1452_v40 = vmul.f32 1.442695, %v1430_v14  ;;  %v3327_v42 = vpop.xlane.xlu1 %1598  ;;  %v1474_v44 = vmul.f32 %v2423_v38, %v1410_v35  ;;  %v1413_v35 = vld [vmem:[#allocation5] sm:$0xff] }
 0x2c3   : > { %v3329_v8 = vpop.xlane.xlu0 %1390  ;;  %2436 = vpow2.f32 %v1660_v6  ;;  %v1639_v15 = vsub.f32 %v3217_v17, %v3327_v42 }
 0x2c4   : > { %v1431_v16 = vsub.f32 %v3219_v19, %v3329_v8  ;;  %v2425_v46 = vpop.eup %2424  ;;  %2438 = vpow2.f32 %v1452_v40  ;;  %1698 = vadd.xlane.f32.xlu1 %v1681_v37  ;;  %1492 = vadd.xlane.f32.xlu0 %v1474_v44 }
 0x2c5   : > { %v2427_v9 = vpop.eup %2426  ;;  %v1662_v48 = vmul.f32 1.442695, %v1639_v15  ;;  %v1683_v55 = vmul.f32 %v2425_v46, %v1619_v49  ;;  %v1622_v49 = vld [vmem:[#allocation7 + $0x20] sm:$0xff] }
 0x2c6   : > { %v1454_v10 = vmul.f32 1.442695, %v1431_v16  ;;  %v3335_v52 = vpop.xlane.xlu1 %1600  ;;  %v1475_v11 = vmul.f32 %v2427_v9, %v1411_v45  ;;  %v1414_v45 = vld [vmem:[#allocation5 + $0x8] sm:$0xff] }
 0x2c7   : > { %v3337_v53 = vpop.xlane.xlu0 %1392  ;;  %2440 = vpow2.f32 %v1662_v48  ;;  %v1640_v17 = vsub.f32 %v3223_v20, %v3335_v52 }
 0x2c8   : > { %v1432_v19 = vsub.f32 %v3225_v21, %v3337_v53  ;;  %v2429_v54 = vpop.eup %2428  ;;  %2442 = vpow2.f32 %v1454_v10  ;;  %1700 = vadd.xlane.f32.xlu1 %v1682_v47  ;;  %1494 = vadd.xlane.f32.xlu0 %v1475_v11 }
 0x2c9   : > { %v2431_v58 = vpop.eup %2430  ;;  %v1664_v59 = vmul.f32 1.442695, %v1640_v17  ;;  %v1684_v37 = vmul.f32 %v2429_v54, %v1620_v61  ;;  %v1623_v61 = vld [vmem:[#allocation7 + $0x58] sm:$0xff] }
 0x2ca   : > { %v1456_v60 = vmul.f32 1.442695, %v1432_v19  ;;  %v3343_v2 = vpop.xlane.xlu1 %1602  ;;  %v1476_v14 = vmul.f32 %v2431_v58, %v1412_v12  ;;  %v1415_v12 = vld [vmem:[#allocation5 + $0x70] sm:$0xff] }
 0x2cb   : > { %v3345_v13 = vpop.xlane.xlu0 %1394  ;;  %2444 = vpow2.f32 %v1664_v59  ;;  %v1641_v20 = vsub.f32 %v3229_v22, %v3343_v2 }
 0x2cc   : > { %v1433_v21 = vsub.f32 %v3231_v24, %v3345_v13  ;;  %v2433_v5 = vpop.eup %2432  ;;  %2446 = vpow2.f32 %v1456_v60  ;;  %1702 = vadd.xlane.f32.xlu1 %v1683_v55  ;;  %1496 = vadd.xlane.f32.xlu0 %v1476_v14 }
 0x2cd   : > { %v2435_v38 = vpop.eup %2434  ;;  %v1666_v6 = vmul.f32 1.442695, %v1641_v20  ;;  %v1685_v47 = vmul.f32 %v2433_v5, %v1621_v41  ;;  %v1624_v41 = vld [vmem:[#allocation7 + $0x78] sm:$0xff] }
 0x2ce   : > { %v1458_v40 = vmul.f32 1.442695, %v1433_v21  ;;  %v3351_v44 = vpop.xlane.xlu1 %1604  ;;  %v1477_v16 = vmul.f32 %v2435_v38, %v1413_v35  ;;  %v1416_v35 = vld [vmem:[#allocation5 + $0x68] sm:$0xff] }
 0x2cf   : > { %v3353_v15 = vpop.xlane.xlu0 %1396  ;;  %2448 = vpow2.f32 %v1666_v6  ;;  %v1642_v22 = vsub.f32 %v3235_v25, %v3351_v44 }
 0x2d0   : > { %v1434_v24 = vsub.f32 %v3237_v26, %v3353_v15  ;;  %v2437_v46 = vpop.eup %2436  ;;  %2450 = vpow2.f32 %v1458_v40  ;;  %1704 = vadd.xlane.f32.xlu1 %v1684_v37  ;;  %1498 = vadd.xlane.f32.xlu0 %v1477_v16 }
 0x2d1   : > { %v2439_v9 = vpop.eup %2438  ;;  %v1668_v48 = vmul.f32 1.442695, %v1642_v22  ;;  %v1686_v55 = vmul.f32 %v2437_v46, %v1622_v49  ;;  %v1625_v49 = vld [vmem:[#allocation7 + $0x10] sm:$0xff] }
 0x2d2   : > { %v1460_v10 = vmul.f32 1.442695, %v1434_v24  ;;  %v3359_v11 = vpop.xlane.xlu1 %1606  ;;  %v1478_v19 = vmul.f32 %v2439_v9, %v1414_v45  ;;  %v1417_v45 = vld [vmem:[#allocation5 + $0x60] sm:$0xff] }
 0x2d3   : > { %v3361_v17 = vpop.xlane.xlu0 %1398  ;;  %2452 = vpow2.f32 %v1668_v48  ;;  %v1643_v25 = vsub.f32 %v3241_v27, %v3359_v11 }
 0x2d4   : > { %v1435_v26 = vsub.f32 %v3243_v28, %v3361_v17  ;;  %v2441_v54 = vpop.eup %2440  ;;  %2454 = vpow2.f32 %v1460_v10  ;;  %1706 = vadd.xlane.f32.xlu1 %v1685_v47  ;;  %1500 = vadd.xlane.f32.xlu0 %v1478_v19 }
 0x2d5   : > { %v2443_v58 = vpop.eup %2442  ;;  %v1670_v59 = vmul.f32 1.442695, %v1643_v25  ;;  %v1687_v37 = vmul.f32 %v2441_v54, %v1623_v61  ;;  %v1626_v61 = vld [vmem:[#allocation7 + $0x60] sm:$0xff] }
 0x2d6   : > { %v1462_v60 = vmul.f32 1.442695, %v1435_v26  ;;  %v3367_v14 = vpop.xlane.xlu1 %1608  ;;  %v1479_v21 = vmul.f32 %v2443_v58, %v1415_v12  ;;  %v1418_v12 = vld [vmem:[#allocation5 + $0x78] sm:$0xff] }
 0x2d7   : > { %v3369_v20 = vpop.xlane.xlu0 %1400  ;;  %2456 = vpow2.f32 %v1670_v59  ;;  %v1644_v27 = vsub.f32 %v3247_v18, %v3367_v14 }
 0x2d8   : > { %v1436_v28 = vsub.f32 %v3249_v29, %v3369_v20  ;;  %v2445_v5 = vpop.eup %2444  ;;  %2458 = vpow2.f32 %v1462_v60  ;;  %1708 = vadd.xlane.f32.xlu1 %v1686_v55  ;;  %1502 = vadd.xlane.f32.xlu0 %v1479_v21 }
 0x2d9   : > { %v2447_v38 = vpop.eup %2446  ;;  %v1672_v6 = vmul.f32 1.442695, %v1644_v27  ;;  %v1688_v47 = vmul.f32 %v2445_v5, %v1624_v41 }
 0x2da   : > { %v1464_v40 = vmul.f32 1.442695, %v1436_v28  ;;  %v3375_v16 = vpop.xlane.xlu1 %1610  ;;  %v1480_v24 = vmul.f32 %v2447_v38, %v1416_v35  ;;  %v1627_v35 = vld [vmem:[#allocation7 + $0x48] sm:$0xff] }
 0x2db   : > { %v3377_v22 = vpop.xlane.xlu0 %1402  ;;  %2460 = vpow2.f32 %v1672_v6  ;;  %v1645_v18 = vsub.f32 %v3253_v23, %v3375_v16 }
 0x2dc   : > { %v1437_v29 = vsub.f32 %v3255_v30, %v3377_v22  ;;  %v2449_v46 = vpop.eup %2448  ;;  %2462 = vpow2.f32 %v1464_v40  ;;  %1710 = vadd.xlane.f32.xlu1 %v1687_v37  ;;  %1504 = vadd.xlane.f32.xlu0 %v1480_v24  ;;  %v1419_v24 = vld [vmem:[#allocation5 + $0x30] sm:$0xff] }
 0x2dd   : > { %v2451_v9 = vpop.eup %2450  ;;  %v1674_v48 = vmul.f32 1.442695, %v1645_v18  ;;  %v1689_v55 = vmul.f32 %v2449_v46, %v1625_v49  ;;  %v1420_v18 = vld [vmem:[#allocation5 + $0x50] sm:$0xff]  ;;  %v1628_v46 = vld [vmem:[#allocation7 + $0x68] sm:$0xff] }
 0x2de   : > { %v1466_v10 = vmul.f32 1.442695, %v1437_v29  ;;  %v3383_v19 = vpop.xlane.xlu1 %1612  ;;  %v1481_v26 = vmul.f32 %v2451_v9, %v1417_v45 }
 0x2df   : > { %v3385_v25 = vpop.xlane.xlu0 %1404  ;;  %2464 = vpow2.f32 %v1674_v48  ;;  %v1646_v23 = vsub.f32 %v3259_v31, %v3383_v19 }
 0x2e0   : > { %v1438_v30 = vsub.f32 %v3261_v32, %v3385_v25  ;;  %v2453_v54 = vpop.eup %2452  ;;  %2466 = vpow2.f32 %v1466_v10  ;;  %1712 = vadd.xlane.f32.xlu1 %v1688_v47  ;;  %1506 = vadd.xlane.f32.xlu0 %v1481_v26  ;;  %v1629_v47 = vld [vmem:[#allocation7 + $0x28] sm:$0xff]  ;;  %v1421_v26 = vld [vmem:[#allocation5 + $0x20] sm:$0xff] }
 0x2e1   : > { %v2455_v58 = vpop.eup %2454  ;;  %v1676_v59 = vmul.f32 1.442695, %v1646_v23  ;;  %v1690_v37 = vmul.f32 %v2453_v54, %v1626_v61  ;;  %v1422_v23 = vld [vmem:[#allocation5 + $0x58] sm:$0xff] }
 0x2e2   : > { %v1468_v60 = vmul.f32 1.442695, %v1438_v30  ;;  %v3391_v21 = vpop.xlane.xlu1 %1614  ;;  %v1482_v27 = vmul.f32 %v2455_v58, %v1418_v12 }
 0x2e3   : > { %v3393_v28 = vpop.xlane.xlu0 %1406  ;;  %2468 = vpow2.f32 %v1676_v59  ;;  %v1647_v31 = vsub.f32 %v3265_v33, %v3391_v21  ;;  %v1631_v59 = vld [vmem:[#allocation7 + $0x30] sm:$0xff] }
 0x2e4   : > { %v1439_v32 = vsub.f32 %v3267_v34, %v3393_v28  ;;  %v2457_v5 = vpop.eup %2456  ;;  %2470 = vpow2.f32 %v1468_v60  ;;  %1714 = vadd.xlane.f32.xlu1 %v1689_v55  ;;  %1508 = vadd.xlane.f32.xlu0 %v1482_v27  ;;  %v1630_v55 = vld [vmem:[#allocation7 + $0x50] sm:$0xff] }
 0x2e5   : > { %v2459_v38 = vpop.eup %2458  ;;  %v1678_v6 = vmul.f32 1.442695, %v1647_v31  ;;  %v1691_v41 = vmul.f32 %v2457_v5, %v1627_v35  ;;  %v1423_v31 = vld [vmem:[#allocation5 + $0x10] sm:$0xff]  ;;  %v1304_v5 = vld [vmem:[#allocation11 + $0x40] sm:$0xff] }
 0x2e6   : > { %v1470_v40 = vmul.f32 1.442695, %v1439_v32  ;;  %v1483_v33 = vmul.f32 %v2459_v38, %v1419_v24  ;;  %v1288_v32 = vld [vmem:[#allocation2 + $0x40] sm:$0xff]  ;;  %v1306_v24 = vld [vmem:[#allocation11 + $0x50] sm:$0xff] }
 0x2e7   : > { %2472 = vpow2.f32 %v1678_v6  ;;  %v1320_v38 = vmul.f32 %v1304_v5, %v1288_v32  ;;  %v1287_v6 = vld [vmem:[#allocation2 + $0x48] sm:$0xff] }
 0x2e8   : > { %v2461_v29 = vpop.eup %2460  ;;  %2474 = vpow2.f32 %v1470_v40  ;;  %1716 = vadd.xlane.f32.xlu1 %v1690_v37  ;;  %1718 = vadd.xlane.f32.xlu0 %v1691_v41  ;;  %v1303_v40 = vld [vmem:[#allocation11 + $0x38] sm:$0xff]  ;;  %v1290_v41 = vld [vmem:[#allocation2 + $0x10] sm:$0xff] }
 0x2e9   : > { %v2463_v45 = vpop.eup %2462  ;;  %v1692_v48 = vmul.f32 %v2461_v29, %v1628_v46  ;;  %v1322_v29 = vmul.f32 %v1306_v24, %v1290_v41  ;;  %v1292_v46 = vld [vmem:[#allocation2 + $0x60] sm:$0xff] }
 0x2ea   : > { %v1484_v34 = vmul.f32 %v2463_v45, %v1420_v18  ;;  %v1319_v18 = vmul.f32 %v1303_v40, %v1287_v6  ;;  %v1305_v45 = vld [vmem:[#allocation11 + $0x48] sm:$0xff] }
 0x2ec   : > { %v2465_v9 = vpop.eup %2464  ;;  %1510 = vadd.xlane.f32.xlu1 %v1483_v33  ;;  %1512 = vadd.xlane.f32.xlu0 %v1484_v34  ;;  %v1289_v33 = vld [vmem:[#allocation2 + $0x20] sm:$0xff] }
 0x2ed   : > { %v2467_v10 = vpop.eup %2466  ;;  %v1693_v49 = vmul.f32 %v2465_v9, %v1629_v47  ;;  %v1308_v34 = vld [vmem:[#allocation11 + $0x60] sm:$0xff]  ;;  %v1321_v47 = vmul.f32 %v1305_v45, %v1289_v33 }
 0x2ee   : > { %v1485_v12 = vmul.f32 %v2467_v10, %v1421_v26  ;;  %v1324_v9 = vmul.f32 %v1308_v34, %v1292_v46  ;;  %v1307_v10 = vld [vmem:[#allocation11 + $0x58] sm:$0xff]  ;;  %v1310_v26 = vld [vmem:[#allocation11 + $0x70] sm:$0xff] }
 0x2f0   : > { %v2469_v30 = vpop.eup %2468  ;;  %1720 = vadd.xlane.f32.xlu1 %v1692_v48  ;;  %1722 = vadd.xlane.f32.xlu0 %v1693_v49  ;;  %v1291_v48 = vld [vmem:[#allocation2 + $0x38] sm:$0xff] }
 0x2f1   : > { %v2471_v54 = vpop.eup %2470  ;;  %v1694_v61 = vmul.f32 %v2469_v30, %v1630_v55  ;;  %v1294_v49 = vld [vmem:[#allocation2 + $0x78] sm:$0xff] }
 0x2f2   : > { %v1486_v58 = vmul.f32 %v2471_v54, %v1422_v23  ;;  %v1323_v23 = vmul.f32 %v1307_v10, %v1291_v48  ;;  %v1326_v30 = vmul.f32 %v1310_v26, %v1294_v49  ;;  %v1309_v54 = vld [vmem:[#allocation11 + $0x68] sm:$0xff] }
 0x2f4   : > { %v2473_v60 = vpop.eup %2472  ;;  %1514 = vadd.xlane.f32.xlu1 %v1485_v12  ;;  %1516 = vadd.xlane.f32.xlu0 %v1486_v58  ;;  %v1293_v12 = vld [vmem:[#allocation2 + $0x70] sm:$0xff]  ;;  %v1295_v58 = vld [vmem:[#allocation2 + $0x28] sm:$0xff] }
 0x2f5   : > { %v2475_v27 = vpop.eup %2474  ;;  %v1695_v35 = vmul.f32 %v2473_v60, %v1631_v59  ;;  %v1325_v55 = vmul.f32 %v1309_v54, %v1293_v12  ;;  %v1311_v59 = vld [vmem:[#allocation11 + $0x78] sm:$0xff] }
 0x2f6   : > { %v1487_v37 = vmul.f32 %v2475_v27, %v1423_v31  ;;  %v1327_v60 = vmul.f32 %v1311_v59, %v1295_v58 }
 0x2f8   : > { %1724 = vadd.xlane.f32.xlu1 %v1694_v61  ;;  %1726 = vadd.xlane.f32.xlu0 %v1695_v35  ;;  %v1329_v61 = vpop.xlane.xlu0 %1328  ;;  %v1331_v35 = vpop.xlane.xlu1 %1330 }
 0x2fc   : > { %1518 = vadd.xlane.f32.xlu1 %v1487_v37  ;;  %1344 = vadd.xlane.f32.xlu0 %v1320_v38  ;;  %v1333_v27 = vpop.xlane.xlu0 %1332  ;;  %v3401_v32 = vpop.xlane.xlu1 %1334 }
 0x300   : > { %1342 = vadd.xlane.f32.xlu1 %v1319_v18  ;;  %1348 = vadd.xlane.f32.xlu0 %v1322_v29  ;;  %v3399_v31 = vpop.xlane.xlu0 %1336  ;;  %v3405_v37 = vpop.xlane.xlu1 %1338 }
 0x304   : > { %1346 = vadd.xlane.f32.xlu1 %v1321_v47  ;;  %1352 = vadd.xlane.f32.xlu0 %v1324_v9  ;;  %v3403_v5 = vpop.xlane.xlu0 %1340 }
 0x308   : > { %1350 = vadd.xlane.f32.xlu1 %v1323_v23  ;;  %1356 = vadd.xlane.f32.xlu0 %v1326_v30 }
 0x30c   : > { %1354 = vadd.xlane.f32.xlu1 %v1325_v55 }
 0x310   : > { %1358 = vadd.xlane.f32.xlu1 %v1327_v60 }
 0x345   : > { %v1489_v38 = vpop.xlane.xlu0 %1488 }
 0x346   : > { %2476 = vlog2.f32 %v1489_v38 }
 0x349   : > { %v1491_v6 = vpop.xlane.xlu1 %1490  ;;  %v1697_v40 = vpop.xlane.xlu0 %1696 }
 0x34a   : > { %2478 = vlog2.f32 %v1491_v6 }
 0x34b   : > { %2480 = vlog2.f32 %v1697_v40 }
 0x34d   : > { %v1699_v41 = vpop.xlane.xlu1 %1698  ;;  %v1493_v24 = vpop.xlane.xlu0 %1492 }
 0x34e   : > { %2482 = vlog2.f32 %v1699_v41 }
 0x34f   : > { %2484 = vlog2.f32 %v1493_v24  ;;  %v1792_v24 = vmul.f32 2.0, %v1329_v61 }
 0x351   : > { %v1701_v18 = vpop.xlane.xlu1 %1700  ;;  %v1495_v29 = vpop.xlane.xlu0 %1494 }
 0x352   : > { %2486 = vlog2.f32 %v1701_v18 }
 0x353   : > { %2488 = vlog2.f32 %v1495_v29  ;;  %v2477_v33 = vpop.eup %2476  ;;  %v1793_v29 = vmul.f32 2.0, %v1331_v35 }
 0x354   : > { %v1521_v47 = vmul.f32 0.6931472, %v2477_v33 }
 0x355   : > { %v1703_v45 = vpop.xlane.xlu1 %1702  ;;  %v1497_v46 = vpop.xlane.xlu0 %1496 }
 0x356   : > { %2490 = vlog2.f32 %v1703_v45  ;;  %v1552_v30 = vadd.f32 %v1521_v47, %v3273_v57 }
 0x357   : > { %v2479_v34 = vpop.eup %2478  ;;  %2492 = vlog2.f32 %v1497_v46 }
 0x358   : > { %v2481_v9 = vpop.eup %2480  ;;  %v1523_v26 = vmul.f32 0.6931472, %v2479_v34 }
 0x359   : > { %v1729_v48 = vmul.f32 0.6931472, %v2481_v9  ;;  %v1705_v10 = vpop.xlane.xlu1 %1704  ;;  %v1499_v49 = vpop.xlane.xlu0 %1498 }
 0x35a   : > { %2494 = vlog2.f32 %v1705_v10  ;;  %v1553_v6 = vadd.f32 %v1523_v26, %v3281_v63  ;;  %v1794_v10 = vmul.f32 2.0, %v1333_v27 }
 0x35b   : > { %v2483_v23 = vpop.eup %2482  ;;  %v1760_v12 = vadd.f32 %v1729_v48, %v3271_v56  ;;  %2496 = vlog2.f32 %v1499_v49 }
 0x35c   : > { %v2485_v54 = vpop.eup %2484  ;;  %v1731_v55 = vmul.f32 0.6931472, %v2483_v23 }
 0x35d   : > { %v1776_v58 = vadd.f32 %v1760_v12, %v1552_v30  ;;  %v1525_v59 = vmul.f32 0.6931472, %v2485_v54  ;;  %v1707_v60 = vpop.xlane.xlu1 %1706  ;;  %v1501_v38 = vpop.xlane.xlu0 %1500 }
 0x35e   : > { %v1761_v40 = vadd.f32 %v1731_v55, %v3279_v62  ;;  %2498 = vlog2.f32 %v1707_v60 }
 0x35f   : > { %v2487_v41 = vpop.eup %2486  ;;  %2500 = vlog2.f32 %v1501_v38  ;;  %v1808_v56 = vsub.f32 %v1776_v58, %v1792_v24  ;;  %v1554_v45 = vadd.f32 %v1525_v59, %v3289_v36 }
 0x360   : > { %v2489_v18 = vpop.eup %2488  ;;  %v1777_v57 = vadd.f32 %v1761_v40, %v1553_v6  ;;  %v1733_v33 = vmul.f32 0.6931472, %v2487_v41 }
 0x361   : > { %v1709_v46 = vpop.xlane.xlu1 %1708  ;;  %v1503_v34 = vpop.xlane.xlu0 %1502  ;;  %v1527_v48 = vmul.f32 0.6931472, %v2489_v18 }
 0x362   : > { %v1809_v47 = vsub.f32 %v1777_v57, %v1793_v29  ;;  %v1762_v9 = vadd.f32 %v1733_v33, %v3287_v4  ;;  %2502 = vlog2.f32 %v1709_v46  ;;  %v1795_v4 = vmul.f32 2.0, %v3401_v32 }
 0x363   : > { %v2491_v63 = vpop.eup %2490  ;;  %v1555_v12 = vadd.f32 %v1527_v48, %v3297_v7  ;;  %2504 = vlog2.f32 %v1503_v34 }
 0x364   : > { %v2493_v62 = vpop.eup %2492  ;;  %v1824_v49 = vadd.f32 %v1809_v47, %v1808_v56  ;;  %v1778_v61 = vadd.f32 %v1762_v9, %v1554_v45  ;;  %v1735_v26 = vmul.f32 0.6931472, %v2491_v63 }
 0x365   : > { %v1711_v23 = vpop.xlane.xlu1 %1710  ;;  %v1505_v35 = vpop.xlane.xlu0 %1504  ;;  %v1529_v54 = vmul.f32 0.6931472, %v2493_v62 }
 0x366   : > { %v1810_v30 = vsub.f32 %v1778_v61, %v1794_v10  ;;  %v1763_v36 = vadd.f32 %v1735_v26, %v3295_v39  ;;  %v1796_v39 = vmul.f32 2.0, %v3399_v31  ;;  %2506 = vlog2.f32 %v1711_v23 }
 0x367   : > { %v2495_v55 = vpop.eup %2494  ;;  %v1556_v41 = vadd.f32 %v1529_v54, %v3305_v3  ;;  %v1797_v3 = vmul.f32 2.0, %v3405_v37  ;;  %2508 = vlog2.f32 %v1505_v35 }
 0x368   : > { %v2497_v58 = vpop.eup %2496  ;;  %v1825_v59 = vadd.f32 %v1824_v49, %v1810_v30  ;;  %v1779_v60 = vadd.f32 %v1763_v36, %v1555_v12  ;;  %v1737_v38 = vmul.f32 0.6931472, %v2495_v55 }
 0x369   : > { %v1713_v6 = vpop.xlane.xlu1 %1712  ;;  %v1507_v27 = vpop.xlane.xlu0 %1506  ;;  %v1531_v18 = vmul.f32 0.6931472, %v2497_v58 }
 0x36a   : > { %v1811_v40 = vsub.f32 %v1779_v60, %v1795_v4  ;;  %v1764_v24 = vadd.f32 %v1737_v38, %v3303_v43  ;;  %2510 = vlog2.f32 %v1713_v6 }
 0x36b   : > { %v2499_v29 = vpop.eup %2498  ;;  %v1557_v47 = vadd.f32 %v1531_v18, %v3313_v51  ;;  %v1798_v51 = vmul.f32 2.0, %v3403_v5 }
 0x36c   : > { %v2501_v7 = vpop.eup %2500  ;;  %v1826_v57 = vadd.f32 %v1825_v59, %v1811_v40  ;;  %v1780_v33 = vadd.f32 %v1764_v24, %v1556_v41  ;;  %v1739_v56 = vmul.f32 0.6931472, %v2499_v29 }
 0x36d   : > { %v1715_v45 = vpop.xlane.xlu1 %1714  ;;  %v1509_v32 = vpop.xlane.xlu0 %1508  ;;  %v1533_v48 = vmul.f32 0.6931472, %v2501_v7 }
 0x36e   : > { %v1812_v46 = vsub.f32 %v1780_v33, %v1796_v39  ;;  %v1765_v9 = vadd.f32 %v1739_v56, %v3311_v50  ;;  %2512 = vlog2.f32 %v1715_v45 }
 0x36f   : > { %v2503_v63 = vpop.eup %2502  ;;  %v1558_v26 = vadd.f32 %v1533_v48, %v3321_v1  ;;  %2514 = vlog2.f32 %v1507_v27 }
 0x370   : > { %v1781_v43 = vadd.f32 %v1765_v9, %v1557_v47  ;;  %v1741_v62 = vmul.f32 0.6931472, %v2503_v63  ;;  %v1827_v10 = vadd.f32 %v1826_v57, %v1812_v46  ;;  %2516 = vlog2.f32 %v1509_v32  ;;  %v2505_v23 = vpop.eup %2504 }
 0x371   : > { %v1717_v49 = vpop.xlane.xlu1 %1716  ;;  %v1719_v31 = vpop.xlane.xlu0 %1718  ;;  %v1535_v41 = vmul.f32 0.6931472, %v2505_v23 }
 0x372   : > { %v1813_v61 = vsub.f32 %v1781_v43, %v1797_v3  ;;  %v1766_v30 = vadd.f32 %v1741_v62, %v3319_v0  ;;  %2518 = vlog2.f32 %v1717_v49 }
 0x373   : > { %v2507_v35 = vpop.eup %2506  ;;  %v1559_v47 = vadd.f32 %v1535_v41, %v3329_v8 }
 0x374   : > { %v1782_v50 = vadd.f32 %v1766_v30, %v1558_v26  ;;  %v1828_v12 = vadd.f32 %v1827_v10, %v1813_v61  ;;  %v2509_v58 = vpop.eup %2508  ;;  %v1743_v6 = vmul.f32 0.6931472, %v2507_v35 }
 0x375   : > { %v1511_v37 = vpop.xlane.xlu1 %1510  ;;  %v1513_v36 = vpop.xlane.xlu0 %1512  ;;  %v1537_v56 = vmul.f32 0.6931472, %v2509_v58 }
 0x376   : > { %v1814_v54 = vsub.f32 %v1782_v50, %v1798_v51  ;;  %2520 = vlog2.f32 %v1511_v37  ;;  %v1767_v33 = vadd.f32 %v1743_v6, %v3327_v42 }
 0x377   : > { %2522 = vlog2.f32 %v1719_v31  ;;  %v2511_v4 = vpop.eup %2510  ;;  %v1560_v42 = vadd.f32 %v1537_v56, %v3337_v53 }
 0x378   : > { %v3425_v34 = vadd.f32 %v1828_v12, %v1814_v54  ;;  %v1745_v24 = vmul.f32 0.6931472, %v2511_v4  ;;  %v1783_v26 = vadd.f32 %v1767_v33, %v1559_v47 }
 0x379   : > { %v1721_v1 = vpop.xlane.xlu1 %1720  ;;  %v1723_v55 = vpop.xlane.xlu0 %1722 }
 0x37a   : > { %2524 = vlog2.f32 %v1721_v1  ;;  %v1768_v9 = vadd.f32 %v1745_v24, %v3335_v52 }
 0x37b   : > { %2526 = vlog2.f32 %v1513_v36  ;;  %v2513_v38 = vpop.eup %2512 }
 0x37c   : > { %2528 = vlog2.f32 %v1723_v55  ;;  %v2515_v27 = vpop.eup %2514  ;;  %v1747_v29 = vmul.f32 0.6931472, %v2513_v38 }
 0x37d   : > { %v1515_v0 = vpop.xlane.xlu1 %1514  ;;  %v1517_v5 = vpop.xlane.xlu0 %1516  ;;  %v1539_v32 = vmul.f32 0.6931472, %v2515_v27 }
 0x37e   : > { %2530 = vlog2.f32 %v1515_v0  ;;  %v2517_v40 = vpop.eup %2516  ;;  %v1769_v43 = vadd.f32 %v1747_v29, %v3343_v2  ;;  %v1784_v2 = vadd.f32 %v1768_v9, %v1560_v42 }
 0x37f   : > { %2532 = vlog2.f32 %v1517_v5  ;;  %v2519_v18 = vpop.eup %2518  ;;  %v1541_v48 = vmul.f32 0.6931472, %v2517_v40  ;;  %v1561_v50 = vadd.f32 %v1539_v32, %v3345_v13 }
 0x380   : > { %v1749_v63 = vmul.f32 0.6931472, %v2519_v18 }
 0x381   : > { %v1725_v59 = vpop.xlane.xlu1 %1724  ;;  %v1727_v60 = vpop.xlane.xlu0 %1726  ;;  %v1562_v37 = vadd.f32 %v1541_v48, %v3353_v15  ;;  %v1785_v5 = vadd.f32 %v1769_v43, %v1561_v50 }
 0x382   : > { %2534 = vlog2.f32 %v1725_v59  ;;  %v1770_v36 = vadd.f32 %v1749_v63, %v3351_v44 }
 0x383   : > { %2536 = vlog2.f32 %v1727_v60  ;;  %v2521_v57 = vpop.eup %2520 }
 0x384   : > { %v2523_v45 = vpop.eup %2522  ;;  %v1543_v62 = vmul.f32 0.6931472, %v2521_v57  ;;  %v1786_v27 = vadd.f32 %v1770_v36, %v1562_v37 }
 0x385   : > { %v1519_v7 = vpop.xlane.xlu1 %1518  ;;  %v1345_v39 = vpop.xlane.xlu0 %1344  ;;  %v1751_v8 = vmul.f32 0.6931472, %v2523_v45 }
 0x386   : > { %2538 = vlog2.f32 %v1519_v7  ;;  %v1800_v61 = vmul.f32 2.0, %v1345_v39  ;;  %v1563_v1 = vadd.f32 %v1543_v62, %v3361_v17 }
 0x387   : > { %v2525_v46 = vpop.eup %2524  ;;  %v1771_v60 = vadd.f32 %v1751_v8, %v3359_v11 }
 0x388   : > { %v2527_v3 = vpop.eup %2526  ;;  %v1753_v12 = vmul.f32 0.6931472, %v2525_v46  ;;  %v1816_v23 = vsub.f32 %v1784_v2, %v1800_v61 }
 0x389   : > { %v1343_v10 = vpop.xlane.xlu1 %1342  ;;  %v1349_v49 = vpop.xlane.xlu0 %1348  ;;  %v1545_v55 = vmul.f32 0.6931472, %v2527_v3  ;;  %v1787_v7 = vadd.f32 %v1771_v60, %v1563_v1 }
 0x38a   : > { %v2529_v31 = vpop.eup %2528  ;;  %v1799_v30 = vmul.f32 2.0, %v1343_v10  ;;  %v1802_v58 = vmul.f32 2.0, %v1349_v49  ;;  %v1772_v15 = vadd.f32 %v1753_v12, %v3367_v14 }
 0x38b   : > { %v2531_v51 = vpop.eup %2530  ;;  %v1755_v44 = vmul.f32 0.6931472, %v2529_v31  ;;  %v1564_v24 = vadd.f32 %v1545_v55, %v3369_v20 }
 0x38c   : > { %v2533_v52 = vpop.eup %2532  ;;  %v1815_v54 = vsub.f32 %v1783_v26, %v1799_v30  ;;  %v1547_v0 = vmul.f32 0.6931472, %v2531_v51  ;;  %v1818_v39 = vsub.f32 %v1786_v27, %v1802_v58 }
 0x38d   : > { %v1347_v53 = vpop.xlane.xlu1 %1346  ;;  %v1353_v4 = vpop.xlane.xlu0 %1352  ;;  %v1549_v38 = vmul.f32 0.6931472, %v2533_v52  ;;  %v1773_v45 = vadd.f32 %v1755_v44, %v3375_v16  ;;  %v1788_v32 = vadd.f32 %v1772_v15, %v1564_v24 }
 0x38e   : > { %v1830_v35 = vadd.f32 %v3425_v34, %v1815_v54  ;;  %v1801_v13 = vmul.f32 2.0, %v1347_v53  ;;  %v1565_v18 = vadd.f32 %v1547_v0, %v3377_v22  ;;  %v1804_v34 = vmul.f32 2.0, %v1353_v4 }
 0x38f   : > { %v2535_v59 = vpop.eup %2534  ;;  %v1566_v46 = vadd.f32 %v1549_v38, %v3385_v25 }
 0x390   : > { %v1757_v6 = vmul.f32 0.6931472, %v2535_v59  ;;  %v1817_v17 = vsub.f32 %v1785_v5, %v1801_v13  ;;  %v1831_v40 = vadd.f32 %v1830_v35, %v1816_v23  ;;  %v2537_v41 = vpop.eup %2536  ;;  %v1820_v22 = vsub.f32 %v1788_v32, %v1804_v34 }
 0x391   : > { %v1351_v29 = vpop.xlane.xlu1 %1350  ;;  %v1357_v14 = vpop.xlane.xlu0 %1356  ;;  %v1759_v47 = vmul.f32 0.6931472, %v2537_v41  ;;  %v1789_v43 = vadd.f32 %v1773_v45, %v1565_v18 }
 0x392   : > { %v1832_v57 = vadd.f32 %v1831_v40, %v1817_v17  ;;  %v1803_v33 = vmul.f32 2.0, %v1351_v29  ;;  %v1774_v11 = vadd.f32 %v1757_v6, %v3383_v19  ;;  %v1806_v63 = vmul.f32 2.0, %v1357_v14 }
 0x393   : > { %v2539_v56 = vpop.eup %2538  ;;  %v1775_v16 = vadd.f32 %v1759_v47, %v3391_v21 }
 0x394   : > { %v1551_v9 = vmul.f32 0.6931472, %v2539_v56  ;;  %v1819_v20 = vsub.f32 %v1787_v7, %v1803_v33  ;;  %v1833_v48 = vadd.f32 %v1832_v57, %v1818_v39  ;;  %v1790_v10 = vadd.f32 %v1774_v11, %v1566_v46 }
 0x395   : > { %v1355_v3 = vpop.xlane.xlu1 %1354 }
 0x396   : > { %v1834_v62 = vadd.f32 %v1833_v48, %v1819_v20  ;;  %v1805_v49 = vmul.f32 2.0, %v1355_v3  ;;  %v1567_v19 = vadd.f32 %v1551_v9, %v3393_v28  ;;  %v1822_v25 = vsub.f32 %v1790_v10, %v1806_v63 }
 0x398   : > { %v1821_v31 = vsub.f32 %v1789_v43, %v1805_v49  ;;  %v1835_v42 = vadd.f32 %v1834_v62, %v1820_v22  ;;  %v1791_v30 = vadd.f32 %v1775_v16, %v1567_v19 }
 0x399   : > { %v1359_v61 = vpop.xlane.xlu1 %1358 }
 0x39a   : > { %v1836_v26 = vadd.f32 %v1835_v42, %v1821_v31  ;;  %v1807_v51 = vmul.f32 2.0, %v1359_v61 }
 0x39c   : > { %v1823_v50 = vsub.f32 %v1791_v30, %v1807_v51  ;;  %v1837_v8 = vadd.f32 %v1836_v26, %v1822_v25 }
 0x39e   : > { %v1838_v12 = vadd.f32 %v1837_v8, %v1823_v50 }
 0x3a0   : > { %v1839_v52 = vrot.slane %v1838_v12, 4 }
 0x3a2   : > { %v1840_v37 = vadd.f32 %v1839_v52, %v1838_v12 }
 0x3a4   : > { %v1841_v36 = vrot.slane %v1840_v37, 2 }
 0x3a6   : > { %v1842_v2 = vadd.f32 %v1841_v36, %v1840_v37 }
 0x3a8   : > { %v1843_v54 = vrot.slane %v1842_v2, 1 }
 0x3aa   : > { %v1844_v1 = vadd.f32 %v1843_v54, %v1842_v2 }
 0x3ac   : > { %1845 = vst [vmem:[%s3019_s14] sm:$0xff] %v1844_v1 }
 0x3ad PF: > { %s18_s29 = sadd.s32 1, %s2750_s29   ;;  %s3533_s26 = sld [smem:[#allocation18_spill]] }
 0x3ae   : > { %p15_p10 = scmp.ge.s32.totalorder %s18_s29, 6   ;;  %s3534_s22 = sld [smem:[#allocation24_spill]] }
 0x3af   : > { %s3535_s23 = sld [smem:[#allocation19_spill]]  ;;  %s3541_s20 = smov %s2714_s21 }
 0x3b0   : > { %s3536_s24 = sld [smem:[#allocation20_spill]] }
 0x3b1   : > { %s3537_s25 = sld [smem:[#allocation25_spill]] }
 0x3b2   : > { %s3538_s27 = sld [smem:[#allocation21_spill]] }
 0x3b3   : > { %s3539_s7 = sld [smem:[#allocation22_spill]]  ;;  %s3542_s21 = smov %s3533_s26 }
 0x3b4   : > { %s3540_s0 = sld [smem:[#allocation23_spill]]  ;;  %s3543_s26 = smov %s2742_s28 }
 0x3b5   :  { %17 = sbr.rel (!%p15_p10) target bundleno = 11 (0xb), region = 108 }
 0x3b9   : > { %s3544_s28 = smov %s3539_s7 }
 0x3ba   :  { %1865 = vsyncpa [#allocation10], 1 }
 0x3bb   :  { %1867 = vsyncpa [#allocation10 + $0x1], 1 }
 0x3bc   :  { %1868 = vsyncpa [#allocation12], 1 }

</bundles_post_ra>
